<compile_context>
chip_gen: v6e
topology: v6e:2x2x1
jax: 0.10.0
libtpu: 0.0.40
codegen_flags: <defaults>
</compile_context>

<pallas_src>
import math

import jax
import jax.numpy as jnp
from jax.experimental import pallas as pl
from jax.experimental.pallas import tpu as pltpu


D_MODEL = 32
N_HEADS = 4
D_HEAD = D_MODEL // N_HEADS
D_FFN = 64
PROJ_H1 = 64
PROJ_H2 = 32
OUT_FEATURES = 4
OUT_PAD = 128            # lane-dense padded output width; sliced back to OUT_FEATURES
VEC_ROWS = 16            # rows of the packed bias / LayerNorm-param slab
MAX_BT = 256             # batch tile (multiple of 16): ~10 MiB live/step, fits v7x 64 MiB
VMEM_LIMIT_BYTES = 48 * 1024 * 1024


# ----------------------------------------------------------------------------
# Fused forward kernel
# ----------------------------------------------------------------------------

def _layernorm(x, g, b, eps=1e-5):
    mu = jnp.mean(x, axis=-1, keepdims=True)
    var = jnp.mean((x - mu) * (x - mu), axis=-1, keepdims=True)
    return (x - mu) * jax.lax.rsqrt(var + eps) * g + b


def _mm(x, w_ref):
    """bf16 x bf16 matmul with f32 MXU accumulation."""
    return jnp.dot(x.astype(jnp.bfloat16), w_ref[...],
                   preferred_element_type=jnp.float32)


def _fused_forward_kernel(
    x_ref, mask_ref,                 # (Bt,S,F_PACK) bf16, (Bt,S) f32 (1.0 = padded)
    we_ref, be_ref,                  # (F_PACK,D) bf16 stacked embed W, (S,D) f32 per-token bias
    wqkv_ref, wo_ref,                # (D,3D), (D,D) bf16
    w1_ref, w2_ref,                  # (D,D_FFN), (D_FFN,D) bf16
    pw1_ref, pw2_ref, pw3_ref,       # (D,64), (64,32), (32,OUT_PAD) bf16
    vec_ref,                         # (VEC_ROWS,128) f32 packed bias / LN slab
    out_ref,                         # (Bt,OUT_PAD) f32
):
    bt, s, fp = x_ref.shape
    d = D_MODEL

    vec = vec_ref[...]
    bqkv = vec[0:1, 0:3 * d]
    bo   = vec[1:2, 0:d]
    ln1g = vec[2:3, 0:d]
    ln1b = vec[3:4, 0:d]
    fb1  = vec[4:5, 0:D_FFN]
    fb2  = vec[5:6, 0:d]
    ln2g = vec[6:7, 0:d]
    ln2b = vec[7:8, 0:d]
    pb1  = vec[8:9, 0:PROJ_H1]
    pb2  = vec[9:10, 0:PROJ_H2]
    pb3  = vec[10:11, 0:OUT_PAD]

    # ---- fused particle embeddings: one block-diagonal matmul + per-token bias + GELU
    x2d = x_ref[...].reshape(bt * s, fp)
    emb = _mm(x2d, we_ref).reshape(bt, s, d) + be_ref[...][None]
    # TODO(synk): PyTorch nn.GELU defaults to exact erf; tanh approximation kept here
    # for guaranteed Mosaic lowering (tiny numeric difference).
    emb = jax.nn.gelu(emb)
    xf = emb.reshape(bt * s, d)

    # ---- fused QKV projection: one lane-dense (D -> 3D) matmul
    qkv = _mm(xf, wqkv_ref) + bqkv                                        # (Bt*S, 3D) f32
    q = qkv[:, 0 * d:1 * d].reshape(bt, s, d)
    k = qkv[:, 1 * d:2 * d].reshape(bt, s, d)
    v = qkv[:, 2 * d:3 * d].reshape(bt, s, d)

    # ---- multi-head attention: heads stacked into the LEADING batch dim so all heads
    #      share one pair of (single-batch-dim) einsums and ONE softmax.
    def split_heads(t):
        return jnp.concatenate(
            [t[:, :, h * D_HEAD:(h + 1) * D_HEAD] for h in range(N_HEADS)], axis=0)

    qs = split_heads(q).astype(jnp.bfloat16)                              # (H*Bt, S, dh)
    ks = split_heads(k).astype(jnp.bfloat16)
    vs = split_heads(v).astype(jnp.bfloat16)

    add_mask = mask_ref[...] * jnp.float32(-1e9)                          # (Bt, S)
    am = jnp.broadcast_to(add_mask[None], (N_HEADS, bt, s)).reshape(N_HEADS * bt, s)

    scale = jnp.float32(1.0 / math.sqrt(D_HEAD))
    sc = jnp.einsum("bqd,bkd->bqk", qs, ks,
                    preferred_element_type=jnp.float32) * scale           # (H*Bt,S,S)
    sc = sc + am[:, None, :]
    sc = sc - jnp.max(sc, axis=-1, keepdims=True)
    p = jnp.exp(sc)
    p = p * pl.reciprocal(jnp.sum(p, axis=-1, keepdims=True), approx=True)
    att_h = jnp.einsum("bqk,bkd->bqd", p.astype(jnp.bfloat16), vs,
                       preferred_element_type=jnp.float32)                # (H*Bt,S,dh)
    att = jnp.concatenate(
        [att_h[h * bt:(h + 1) * bt] for h in range(N_HEADS)], axis=-1)    # (Bt,S,D)
    att = att.reshape(bt * s, d)

    # ---- O-proj + residual + LayerNorm, FFN + residual + LayerNorm (post-LN encoder)
    att = _mm(att, wo_ref) + bo
    x1 = _layernorm(xf + att, ln1g, ln1b)

    ff = jnp.maximum(_mm(x1, w1_ref) + fb1, 0.0)
    ff = _mm(ff, w2_ref) + fb2
    x2 = _layernorm(x1 + ff, ln2g, ln2b)

    # ---- projection head: mean pool over sequence + 3-layer MLP (last padded to 128)
    pooled = jnp.mean(x2.reshape(bt, s, d), axis=1)                       # (Bt, D)
    h1 = jnp.maximum(_mm(pooled, pw1_ref) + pb1, 0.0)
    h2 = jnp.maximum(_mm(h1, pw2_ref) + pb2, 0.0)
    out_ref[...] = _mm(h2, pw3_ref) + pb3                                 # (Bt, OUT_PAD)


# ----------------------------------------------------------------------------
# Parameters
# ----------------------------------------------------------------------------

def init_params(key, feat_dims):
    """Deterministic init. Biases stored as (1,N); final proj layer padded to OUT_PAD."""
    keys = iter(jax.random.split(key, 40))

    def dense(fan_in, fan_out, w_scale=0.15, b_scale=0.1):
        w = w_scale * jax.random.normal(next(keys), (fan_in, fan_out), jnp.float32)
        b = b_scale * jax.random.normal(next(keys), (1, fan_out), jnp.float32)
        return w, b

    params = {}
    for name in ["tau", "tauprod", "jets", "met", "mass"]:
        params[f"{name}_w"], params[f"{name}_b"] = dense(feat_dims[name], D_MODEL)

    wq, bq = dense(D_MODEL, D_MODEL)
    wk, bk = dense(D_MODEL, D_MODEL)
    wv, bv = dense(D_MODEL, D_MODEL)
    params["wqkv"] = jnp.concatenate([wq, wk, wv], axis=1)                # (D, 3D)
    params["bqkv"] = jnp.concatenate([bq, bk, bv], axis=1)                # (1, 3D)
    params["wo"], params["bo"] = dense(D_MODEL, D_MODEL)
    params["ffn_w1"], params["ffn_b1"] = dense(D_MODEL, D_FFN)
    params["ffn_w2"], params["ffn_b2"] = dense(D_FFN, D_MODEL)
    for i in (1, 2):
        params[f"ln{i}_g"] = 1.0 + 0.1 * jax.random.normal(next(keys), (1, D_MODEL), jnp.float32)
        params[f"ln{i}_b"] = 0.1 * jax.random.normal(next(keys), (1, D_MODEL), jnp.float32)

    params["proj_w1"], params["proj_b1"] = dense(D_MODEL, PROJ_H1)
    params["proj_w2"], params["proj_b2"] = dense(PROJ_H1, PROJ_H2)
    w3, b3 = dense(PROJ_H2, OUT_FEATURES)
    params["proj_w3"] = jnp.zeros((PROJ_H2, OUT_PAD), jnp.float32).at[:, :OUT_FEATURES].set(w3)
    params["proj_b3"] = jnp.zeros((1, OUT_PAD), jnp.float32).at[:, :OUT_FEATURES].set(b3)
    return params


# ----------------------------------------------------------------------------
# Wrapper: packing + pallas_call
# ----------------------------------------------------------------------------

def multi_scale_transformer_forward(params, taus, jets, met, mass, tauprods, padding_masks):
    parts = [taus, tauprods, jets, met, mass]          # sequence order of the model
    names = ["tau", "tauprod", "jets", "met", "mass"]
    B = taus.shape[0]
    lens = [p.shape[1] for p in parts]
    feats = [p.shape[2] for p in parts]
    S = sum(lens)
    f_raw = sum(feats)
    f_pack = ((f_raw + 7) // 8) * 8

    # --- pack the 5 per-type inputs into one block-diagonal feature tensor (B,S,F_PACK)
    offs, o = [], 0
    for f in feats:
        offs.append(o)
        o += f
    packed = [jnp.pad(x, ((0, 0), (0, 0), (off, f_pack - off - f)))
              for x, off, f in zip(parts, offs, feats)]
    x_packed = jnp.concatenate(packed, axis=1).astype(jnp.bfloat16)

    # --- stack embedding weights / per-token biases to match the packing
    w_stack = jnp.concatenate([params[f"{n}_w"] for n in names], axis=0)  # (f_raw, D)
    w_embed = jnp.zeros((f_pack, D_MODEL), jnp.float32).at[:f_raw].set(w_stack)
    w_embed = w_embed.astype(jnp.bfloat16)
    b_embed = jnp.concatenate(
        [jnp.broadcast_to(params[f"{n}_b"], (l, D_MODEL)) for n, l in zip(names, lens)],
        axis=0)                                                           # (S, D) f32

    # --- pack all (1,N) bias / LayerNorm vectors into one (VEC_ROWS,128) f32 slab
    slab = jnp.zeros((VEC_ROWS, 128), jnp.float32)
    rows = [("bqkv", 3 * D_MODEL), ("bo", D_MODEL), ("ln1_g", D_MODEL), ("ln1_b", D_MODEL),
            ("ffn_b1", D_FFN), ("ffn_b2", D_MODEL), ("ln2_g", D_MODEL), ("ln2_b", D_MODEL),
            ("proj_b1", PROJ_H1), ("proj_b2", PROJ_H2), ("proj_b3", OUT_PAD)]
    for r, (name, width) in enumerate(rows):
        slab = slab.at[r, :width].set(params[name][0])

    weights = [
        w_embed, b_embed,
        params["wqkv"].astype(jnp.bfloat16), params["wo"].astype(jnp.bfloat16),
        params["ffn_w1"].astype(jnp.bfloat16), params["ffn_w2"].astype(jnp.bfloat16),
        params["proj_w1"].astype(jnp.bfloat16), params["proj_w2"].astype(jnp.bfloat16),
        params["proj_w3"].astype(jnp.bfloat16),
        slab,
    ]

    mask_f32 = padding_masks.astype(jnp.float32)                          # 1.0 = padded

    # --- batch tiling: whole batch per step if small, else MAX_BT-sample tiles (padded)
    if B <= MAX_BT:
        Bt, Bpad = B, B
    else:
        Bt = MAX_BT
        Bpad = ((B + Bt - 1) // Bt) * Bt
    if Bpad != B:
        x_packed = jnp.pad(x_packed, ((0, Bpad - B), (0, 0), (0, 0)))
        mask_f32 = jnp.pad(mask_f32, ((0, Bpad - B), (0, 0)), constant_values=1.0)

    grid = (Bpad // Bt,)
    data_specs = [
        pl.BlockSpec((Bt, S, f_pack), lambda b: (b, 0, 0)),
        pl.BlockSpec((Bt, S), lambda b: (b, 0)),
    ]
    # TODO(synk): mark these constant-index weight blocks pipeline_mode=pl.Buffered(1)
    # (single buffer) once verified on the target jax version; they never change
    # across grid steps.
    weight_specs = [pl.BlockSpec(w.shape, lambda b, n=w.ndim: (0,) * n) for w in weights]

    out = pl.pallas_call(
        _fused_forward_kernel,
        out_shape=jax.ShapeDtypeStruct((Bpad, OUT_PAD), jnp.float32),
        grid=grid,
        in_specs=data_specs + weight_specs,
        out_specs=pl.BlockSpec((Bt, OUT_PAD), lambda b: (b, 0)),
        compiler_params=pltpu.CompilerParams(
            dimension_semantics=("parallel",),
            vmem_limit_bytes=VMEM_LIMIT_BYTES,
        ),
    )(x_packed, mask_f32, *weights)
    return out[:B, :OUT_FEATURES]


# ----------------------------------------------------------------------------
# Pure-JAX f32 reference (same math, exact softmax, no bf16) for the check
# ----------------------------------------------------------------------------

def reference_forward(params, taus, jets, met, mass, tauprods, padding_masks):
    def embed(x, w, b):
        return jax.nn.gelu(x @ w + b)

    objs = jnp.concatenate([
        embed(taus, params["tau_w"], params["tau_b"]),
        embed(tauprods, params["tauprod_w"], params["tauprod_b"]),
        embed(jets, params["jets_w"], params["jets_b"]),
        embed(met, params["met_w"], params["met_b"]),
        embed(mass, params["mass_w"], params["mass_b"]),
    ], axis=1)
    B, S, D = objs.shape

    qkv = objs @ params["wqkv"] + params["bqkv"]
    q, k, v = jnp.split(qkv, 3, axis=-1)
    q = q.reshape(B, S, N_HEADS, D_HEAD).transpose(0, 2, 1, 3)
    k = k.reshape(B, S, N_HEADS, D_HEAD).transpose(0, 2, 1, 3)
    v = v.reshape(B, S, N_HEADS, D_HEAD).transpose(0, 2, 1, 3)
    add_mask = jnp.where(padding_masks, -1e9, 0.0)[:, None, None, :]
    sc = jnp.einsum("bhqd,bhkd->bhqk", q, k) / math.sqrt(D_HEAD) + add_mask
    p = jax.nn.softmax(sc, axis=-1)
    att = jnp.einsum("bhqk,bhkd->bhqd", p, v).transpose(0, 2, 1, 3).reshape(B, S, D)
    att = att @ params["wo"] + params["bo"]

    def ln(x, g, b):
        mu = x.mean(-1, keepdims=True)
        var = ((x - mu) ** 2).mean(-1, keepdims=True)
        return (x - mu) * jax.lax.rsqrt(var + 1e-5) * g + b

    x1 = ln(objs + att, params["ln1_g"], params["ln1_b"])
    ff = jax.nn.relu(x1 @ params["ffn_w1"] + params["ffn_b1"])
    ff = ff @ params["ffn_w2"] + params["ffn_b2"]
    x2 = ln(x1 + ff, params["ln2_g"], params["ln2_b"])

    pooled = x2.mean(axis=1)
    h = jax.nn.relu(pooled @ params["proj_w1"] + params["proj_b1"])
    h = jax.nn.relu(h @ params["proj_w2"] + params["proj_b2"])
    out = h @ params["proj_w3"] + params["proj_b3"]
    return out[:, :OUT_FEATURES]


# ----------------------------------------------------------------------------
# Driver
# ----------------------------------------------------------------------------

if __name__ == "__main__":
    key = jax.random.PRNGKey(0)
    k_par, k_tau, k_tp, k_jet, k_met, k_mass = jax.random.split(key, 6)

    B = 2
    n_tau, n_tauprod, n_jets, n_met, n_mass = 2, 4, 8, 1, 1      # total seq S = 16
    feat_dims = {"tau": 8, "tauprod": 8, "jets": 8, "met": 8, "mass": 4}

    params = init_params(k_par, feat_dims)

    taus = jax.random.normal(k_tau, (B, n_tau, feat_dims["tau"]), jnp.float32)
    tauprods = jax.random.normal(k_tp, (B, n_tauprod, feat_dims["tauprod"]), jnp.float32)
    jets = jax.random.normal(k_jet, (B, n_jets, feat_dims["jets"]), jnp.float32)
    met = jax.random.normal(k_met, (B, n_met, feat_dims["met"]), jnp.float32)
    mass = jax.random.normal(k_mass, (B, n_mass, feat_dims["mass"]), jnp.float32)

    S = n_tau + n_tauprod + n_jets + n_met + n_mass
    # pad the last 3 jet slots of batch element 1 (True = padded, ignored by attention)
    padding_masks = jnp.zeros((B, S), dtype=bool)
    padding_masks = padding_masks.at[1, n_tau + n_tauprod + 5:n_tau + n_tauprod + 8].set(True)

    fwd = jax.jit(multi_scale_transformer_forward)
    out = jax.block_until_ready(fwd(params, taus, jets, met, mass, tauprods, padding_masks))

    ref = reference_forward(params, taus, jets, met, mass, tauprods, padding_masks)

    assert out.shape == (B, OUT_FEATURES)
    assert bool(jnp.all(jnp.isfinite(out)))
    # bf16 matmul operands + approx reciprocal in-kernel vs exact-f32 reference:
    scale_ref = float(jnp.max(jnp.abs(ref)))
    max_err = float(jnp.max(jnp.abs(out - ref)))
    assert max_err <= 5e-2 * scale_ref + 1e-4, (max_err, scale_ref)
    print("KERNEL_OK")
</pallas_src>

<mosaic_0001>
module attributes {stable_mosaic.version = 11 : i64} {
  func.func @_fused_forward_kernel(%arg0: i32, %arg1: memref<2x16x40xbf16, #tpu.memory_space<vmem>>, %arg2: memref<2x16xf32, #tpu.memory_space<vmem>>, %arg3: memref<40x32xbf16, #tpu.memory_space<vmem>>, %arg4: memref<16x32xf32, #tpu.memory_space<vmem>>, %arg5: memref<32x96xbf16, #tpu.memory_space<vmem>>, %arg6: memref<32x32xbf16, #tpu.memory_space<vmem>>, %arg7: memref<32x64xbf16, #tpu.memory_space<vmem>>, %arg8: memref<64x32xbf16, #tpu.memory_space<vmem>>, %arg9: memref<32x64xbf16, #tpu.memory_space<vmem>>, %arg10: memref<64x32xbf16, #tpu.memory_space<vmem>>, %arg11: memref<32x128xbf16, #tpu.memory_space<vmem>>, %arg12: memref<16x128xf32, #tpu.memory_space<vmem>>, %arg13: memref<2x128xf32, #tpu.memory_space<vmem>>) attributes {dimension_semantics = [#tpu.dimension_semantics<parallel>], iteration_bounds = array<i64: 1>, scalar_prefetch = 0 : i64, scratch_operands = 0 : i64, tpu.core_type = #tpu.core_type<tc>, window_params = [{transform_indices = @transform_0, window_bounds = array<i64: 2, 16, 40>}, {transform_indices = @transform_1, window_bounds = array<i64: 2, 16>}, {pipeline_mode = #tpu.pipeline_mode<synchronous>, transform_indices = @transform_2, window_bounds = array<i64: 40, 32>}, {pipeline_mode = #tpu.pipeline_mode<synchronous>, transform_indices = @transform_3, window_bounds = array<i64: 16, 32>}, {pipeline_mode = #tpu.pipeline_mode<synchronous>, transform_indices = @transform_4, window_bounds = array<i64: 32, 96>}, {pipeline_mode = #tpu.pipeline_mode<synchronous>, transform_indices = @transform_5, window_bounds = array<i64: 32, 32>}, {pipeline_mode = #tpu.pipeline_mode<synchronous>, transform_indices = @transform_6, window_bounds = array<i64: 32, 64>}, {pipeline_mode = #tpu.pipeline_mode<synchronous>, transform_indices = @transform_7, window_bounds = array<i64: 64, 32>}, {pipeline_mode = #tpu.pipeline_mode<synchronous>, transform_indices = @transform_8, window_bounds = array<i64: 32, 64>}, {pipeline_mode = #tpu.pipeline_mode<synchronous>, transform_indices = @transform_9, window_bounds = array<i64: 64, 32>}, {pipeline_mode = #tpu.pipeline_mode<synchronous>, transform_indices = @transform_10, window_bounds = array<i64: 32, 128>}, {pipeline_mode = #tpu.pipeline_mode<synchronous>, transform_indices = @transform_11, window_bounds = array<i64: 16, 128>}, {transform_indices = @transform_12, window_bounds = array<i64: 2, 128>}]} {
    %c0 = arith.constant 0 : index
    %c0_0 = arith.constant 0 : index
    %0 = vector.load %arg12[%c0, %c0_0] : memref<16x128xf32, #tpu.memory_space<vmem>>, vector<16x128xf32>
    %1 = vector.extract_strided_slice %0 {offsets = [0, 0], sizes = [1, 96], strides = [1, 1]} : vector<16x128xf32> to vector<1x96xf32>
    %2 = vector.extract_strided_slice %0 {offsets = [1, 0], sizes = [1, 32], strides = [1, 1]} : vector<16x128xf32> to vector<1x32xf32>
    %3 = vector.extract_strided_slice %0 {offsets = [2, 0], sizes = [1, 32], strides = [1, 1]} : vector<16x128xf32> to vector<1x32xf32>
    %4 = vector.extract_strided_slice %0 {offsets = [3, 0], sizes = [1, 32], strides = [1, 1]} : vector<16x128xf32> to vector<1x32xf32>
    %5 = vector.extract_strided_slice %0 {offsets = [4, 0], sizes = [1, 64], strides = [1, 1]} : vector<16x128xf32> to vector<1x64xf32>
    %6 = vector.extract_strided_slice %0 {offsets = [5, 0], sizes = [1, 32], strides = [1, 1]} : vector<16x128xf32> to vector<1x32xf32>
    %7 = vector.extract_strided_slice %0 {offsets = [6, 0], sizes = [1, 32], strides = [1, 1]} : vector<16x128xf32> to vector<1x32xf32>
    %8 = vector.extract_strided_slice %0 {offsets = [7, 0], sizes = [1, 32], strides = [1, 1]} : vector<16x128xf32> to vector<1x32xf32>
    %9 = vector.extract_strided_slice %0 {offsets = [8, 0], sizes = [1, 64], strides = [1, 1]} : vector<16x128xf32> to vector<1x64xf32>
    %10 = vector.extract_strided_slice %0 {offsets = [9, 0], sizes = [1, 32], strides = [1, 1]} : vector<16x128xf32> to vector<1x32xf32>
    %11 = vector.extract_strided_slice %0 {offsets = [10, 0], sizes = [1, 128], strides = [1, 1]} : vector<16x128xf32> to vector<1x128xf32>
    %c0_1 = arith.constant 0 : index
    %c0_2 = arith.constant 0 : index
    %c0_3 = arith.constant 0 : index
    %12 = vector.load %arg1[%c0_1, %c0_2, %c0_3] : memref<2x16x40xbf16, #tpu.memory_space<vmem>>, vector<2x16x40xbf16>
    %13 = vector.shape_cast %12 : vector<2x16x40xbf16> to vector<32x40xbf16>
    %c0_4 = arith.constant 0 : index
    %c0_5 = arith.constant 0 : index
    %14 = vector.load %arg3[%c0_4, %c0_5] : memref<40x32xbf16, #tpu.memory_space<vmem>>, vector<40x32xbf16>
    %cst = arith.constant dense<0.000000e+00> : vector<32x32xf32>
    %15 = tpu.matmul %13, %14, %cst {dimension_numbers = #tpu.dot_dimension_numbers<[1], [0], [0], [1], [0, 0, 1, 1], [], []>} : vector<32x40xbf16>, vector<40x32xbf16>, vector<32x32xf32> -> vector<32x32xf32>
    %16 = vector.shape_cast %15 : vector<32x32xf32> to vector<2x16x32xf32>
    %c0_6 = arith.constant 0 : index
    %c0_7 = arith.constant 0 : index
    %17 = vector.load %arg4[%c0_6, %c0_7] : memref<16x32xf32, #tpu.memory_space<vmem>>, vector<16x32xf32>
    %18 = vector.shape_cast %17 : vector<16x32xf32> to vector<1x16x32xf32>
    %19 = vector.broadcast %18 : vector<1x16x32xf32> to vector<2x16x32xf32>
    %20 = arith.addf %16, %19 : vector<2x16x32xf32>
    %21 = arith.mulf %20, %20 : vector<2x16x32xf32>
    %22 = arith.mulf %20, %21 : vector<2x16x32xf32>
    %cst_8 = arith.constant 4.471500e-02 : f32
    %23 = vector.broadcast %cst_8 : f32 to vector<2x16x32xf32>
    %24 = arith.mulf %23, %22 : vector<2x16x32xf32>
    %25 = arith.addf %20, %24 : vector<2x16x32xf32>
    %cst_9 = arith.constant 0.797884583 : f32
    %26 = vector.broadcast %cst_9 : f32 to vector<2x16x32xf32>
    %27 = arith.mulf %26, %25 : vector<2x16x32xf32>
    %28 = math.tanh %27 : vector<2x16x32xf32>
    %cst_10 = arith.constant 1.000000e+00 : f32
    %29 = vector.broadcast %cst_10 : f32 to vector<2x16x32xf32>
    %30 = arith.addf %29, %28 : vector<2x16x32xf32>
    %cst_11 = arith.constant 5.000000e-01 : f32
    %31 = vector.broadcast %cst_11 : f32 to vector<2x16x32xf32>
    %32 = arith.mulf %31, %30 : vector<2x16x32xf32>
    %33 = arith.mulf %20, %32 : vector<2x16x32xf32>
    %34 = vector.shape_cast %33 : vector<2x16x32xf32> to vector<32x32xf32>
    %35 = arith.truncf %34 : vector<32x32xf32> to vector<32x32xbf16>
    %c0_12 = arith.constant 0 : index
    %c0_13 = arith.constant 0 : index
    %36 = vector.load %arg5[%c0_12, %c0_13] : memref<32x96xbf16, #tpu.memory_space<vmem>>, vector<32x96xbf16>
    %cst_14 = arith.constant dense<0.000000e+00> : vector<32x96xf32>
    %37 = tpu.matmul %35, %36, %cst_14 {dimension_numbers = #tpu.dot_dimension_numbers<[1], [0], [0], [1], [0, 0, 1, 1], [], []>} : vector<32x32xbf16>, vector<32x96xbf16>, vector<32x96xf32> -> vector<32x96xf32>
    %38 = vector.broadcast %1 : vector<1x96xf32> to vector<32x96xf32>
    %39 = arith.addf %37, %38 : vector<32x96xf32>
    %40 = vector.extract_strided_slice %39 {offsets = [0, 0], sizes = [32, 32], strides = [1, 1]} : vector<32x96xf32> to vector<32x32xf32>
    %41 = vector.shape_cast %40 : vector<32x32xf32> to vector<2x16x32xf32>
    %42 = vector.extract_strided_slice %39 {offsets = [0, 32], sizes = [32, 32], strides = [1, 1]} : vector<32x96xf32> to vector<32x32xf32>
    %43 = vector.shape_cast %42 : vector<32x32xf32> to vector<2x16x32xf32>
    %44 = vector.extract_strided_slice %39 {offsets = [0, 64], sizes = [32, 32], strides = [1, 1]} : vector<32x96xf32> to vector<32x32xf32>
    %45 = vector.shape_cast %44 : vector<32x32xf32> to vector<2x16x32xf32>
    %46 = vector.extract_strided_slice %41 {offsets = [0, 0, 0], sizes = [2, 16, 8], strides = [1, 1, 1]} : vector<2x16x32xf32> to vector<2x16x8xf32>
    %47 = vector.extract_strided_slice %41 {offsets = [0, 0, 8], sizes = [2, 16, 8], strides = [1, 1, 1]} : vector<2x16x32xf32> to vector<2x16x8xf32>
    %48 = vector.extract_strided_slice %41 {offsets = [0, 0, 16], sizes = [2, 16, 8], strides = [1, 1, 1]} : vector<2x16x32xf32> to vector<2x16x8xf32>
    %49 = vector.extract_strided_slice %41 {offsets = [0, 0, 24], sizes = [2, 16, 8], strides = [1, 1, 1]} : vector<2x16x32xf32> to vector<2x16x8xf32>
    %50 = tpu.concatenate %46, %47, %48, %49 in 0 : vector<2x16x8xf32>, vector<2x16x8xf32>, vector<2x16x8xf32>, vector<2x16x8xf32> -> vector<8x16x8xf32>
    %51 = arith.truncf %50 : vector<8x16x8xf32> to vector<8x16x8xbf16>
    %52 = vector.extract_strided_slice %43 {offsets = [0, 0, 0], sizes = [2, 16, 8], strides = [1, 1, 1]} : vector<2x16x32xf32> to vector<2x16x8xf32>
    %53 = vector.extract_strided_slice %43 {offsets = [0, 0, 8], sizes = [2, 16, 8], strides = [1, 1, 1]} : vector<2x16x32xf32> to vector<2x16x8xf32>
    %54 = vector.extract_strided_slice %43 {offsets = [0, 0, 16], sizes = [2, 16, 8], strides = [1, 1, 1]} : vector<2x16x32xf32> to vector<2x16x8xf32>
    %55 = vector.extract_strided_slice %43 {offsets = [0, 0, 24], sizes = [2, 16, 8], strides = [1, 1, 1]} : vector<2x16x32xf32> to vector<2x16x8xf32>
    %56 = tpu.concatenate %52, %53, %54, %55 in 0 : vector<2x16x8xf32>, vector<2x16x8xf32>, vector<2x16x8xf32>, vector<2x16x8xf32> -> vector<8x16x8xf32>
    %57 = arith.truncf %56 : vector<8x16x8xf32> to vector<8x16x8xbf16>
    %58 = vector.extract_strided_slice %45 {offsets = [0, 0, 0], sizes = [2, 16, 8], strides = [1, 1, 1]} : vector<2x16x32xf32> to vector<2x16x8xf32>
    %59 = vector.extract_strided_slice %45 {offsets = [0, 0, 8], sizes = [2, 16, 8], strides = [1, 1, 1]} : vector<2x16x32xf32> to vector<2x16x8xf32>
    %60 = vector.extract_strided_slice %45 {offsets = [0, 0, 16], sizes = [2, 16, 8], strides = [1, 1, 1]} : vector<2x16x32xf32> to vector<2x16x8xf32>
    %61 = vector.extract_strided_slice %45 {offsets = [0, 0, 24], sizes = [2, 16, 8], strides = [1, 1, 1]} : vector<2x16x32xf32> to vector<2x16x8xf32>
    %62 = tpu.concatenate %58, %59, %60, %61 in 0 : vector<2x16x8xf32>, vector<2x16x8xf32>, vector<2x16x8xf32>, vector<2x16x8xf32> -> vector<8x16x8xf32>
    %63 = arith.truncf %62 : vector<8x16x8xf32> to vector<8x16x8xbf16>
    %c0_15 = arith.constant 0 : index
    %c0_16 = arith.constant 0 : index
    %64 = vector.load %arg2[%c0_15, %c0_16] : memref<2x16xf32, #tpu.memory_space<vmem>>, vector<2x16xf32>
    %cst_17 = arith.constant -1.000000e+09 : f32
    %65 = vector.broadcast %cst_17 : f32 to vector<2x16xf32>
    %66 = arith.mulf %64, %65 : vector<2x16xf32>
    %67 = vector.shape_cast %66 : vector<2x16xf32> to vector<1x2x16xf32>
    %68 = vector.shape_cast %67 : vector<1x2x16xf32> to vector<1x2x16xf32>
    %69 = vector.broadcast %68 : vector<1x2x16xf32> to vector<4x2x16xf32>
    %70 = vector.shape_cast %69 : vector<4x2x16xf32> to vector<8x16xf32>
    "tpu.trace_start"() <{level = 10 : i32, message = "bqd,bkd->bqk"}> : () -> ()
    %cst_18 = arith.constant dense<0.000000e+00> : vector<8x16x16xf32>
    %71 = tpu.matmul %51, %57, %cst_18 {dimension_numbers = #tpu.dot_dimension_numbers<[2], [2], [1], [1], [0, 0, 0, 1, 1, 1], [0], [0]>} : vector<8x16x8xbf16>, vector<8x16x8xbf16>, vector<8x16x16xf32> -> vector<8x16x16xf32>
    "tpu.trace_stop"() : () -> ()
    %cst_19 = arith.constant 0.353553385 : f32
    %72 = vector.broadcast %cst_19 : f32 to vector<8x16x16xf32>
    %73 = arith.mulf %71, %72 : vector<8x16x16xf32>
    %74 = vector.shape_cast %70 : vector<8x16xf32> to vector<8x1x16xf32>
    %75 = vector.broadcast %74 : vector<8x1x16xf32> to vector<8x16x16xf32>
    %76 = arith.addf %73, %75 : vector<8x16x16xf32>
    %cst_20 = arith.constant dense<0xFF800000> : vector<8x16xf32>
    %77 = vector.multi_reduction <maximumf>, %76, %cst_20 [2] : vector<8x16x16xf32> to vector<8x16xf32>
    %78 = vector.shape_cast %77 : vector<8x16xf32> to vector<8x16x1xf32>
    %79 = vector.broadcast %78 : vector<8x16x1xf32> to vector<8x16x16xf32>
    %80 = arith.subf %76, %79 : vector<8x16x16xf32>
    %81 = math.exp %80 : vector<8x16x16xf32>
    %cst_21 = arith.constant dense<0.000000e+00> : vector<8x16xf32>
    %82 = vector.multi_reduction <add>, %81, %cst_21 [2] : vector<8x16x16xf32> to vector<8x16xf32>
    %83 = vector.shape_cast %82 : vector<8x16xf32> to vector<8x16x1xf32>
    %84 = tpu.reciprocal %83 {approx = true} : vector<8x16x1xf32> -> vector<8x16x1xf32>
    %85 = vector.broadcast %84 : vector<8x16x1xf32> to vector<8x16x16xf32>
    %86 = arith.mulf %81, %85 : vector<8x16x16xf32>
    %87 = arith.truncf %86 : vector<8x16x16xf32> to vector<8x16x16xbf16>
    "tpu.trace_start"() <{level = 10 : i32, message = "bqk,bkd->bqd"}> : () -> ()
    %cst_22 = arith.constant dense<0.000000e+00> : vector<8x16x8xf32>
    %88 = tpu.matmul %87, %63, %cst_22 {dimension_numbers = #tpu.dot_dimension_numbers<[2], [1], [1], [2], [0, 0, 0, 1, 1, 2], [0], [0]>} : vector<8x16x16xbf16>, vector<8x16x8xbf16>, vector<8x16x8xf32> -> vector<8x16x8xf32>
    "tpu.trace_stop"() : () -> ()
    %89 = vector.extract_strided_slice %88 {offsets = [0, 0, 0], sizes = [2, 16, 8], strides = [1, 1, 1]} : vector<8x16x8xf32> to vector<2x16x8xf32>
    %90 = vector.extract_strided_slice %88 {offsets = [2, 0, 0], sizes = [2, 16, 8], strides = [1, 1, 1]} : vector<8x16x8xf32> to vector<2x16x8xf32>
    %91 = vector.extract_strided_slice %88 {offsets = [4, 0, 0], sizes = [2, 16, 8], strides = [1, 1, 1]} : vector<8x16x8xf32> to vector<2x16x8xf32>
    %92 = vector.extract_strided_slice %88 {offsets = [6, 0, 0], sizes = [2, 16, 8], strides = [1, 1, 1]} : vector<8x16x8xf32> to vector<2x16x8xf32>
    %93 = tpu.concatenate %89, %90, %91, %92 in 2 : vector<2x16x8xf32>, vector<2x16x8xf32>, vector<2x16x8xf32>, vector<2x16x8xf32> -> vector<2x16x32xf32>
    %94 = vector.shape_cast %93 : vector<2x16x32xf32> to vector<32x32xf32>
    %95 = arith.truncf %94 : vector<32x32xf32> to vector<32x32xbf16>
    %c0_23 = arith.constant 0 : index
    %c0_24 = arith.constant 0 : index
    %96 = vector.load %arg6[%c0_23, %c0_24] : memref<32x32xbf16, #tpu.memory_space<vmem>>, vector<32x32xbf16>
    %cst_25 = arith.constant dense<0.000000e+00> : vector<32x32xf32>
    %97 = tpu.matmul %95, %96, %cst_25 {dimension_numbers = #tpu.dot_dimension_numbers<[1], [0], [0], [1], [0, 0, 1, 1], [], []>} : vector<32x32xbf16>, vector<32x32xbf16>, vector<32x32xf32> -> vector<32x32xf32>
    %98 = vector.broadcast %2 : vector<1x32xf32> to vector<32x32xf32>
    %99 = arith.addf %97, %98 : vector<32x32xf32>
    %100 = arith.addf %34, %99 : vector<32x32xf32>
    %cst_26 = arith.constant dense<0.000000e+00> : vector<32xf32>
    %101 = vector.multi_reduction <add>, %100, %cst_26 [1] : vector<32x32xf32> to vector<32xf32>
    %102 = vector.shape_cast %101 : vector<32xf32> to vector<32x1xf32>
    %cst_27 = arith.constant 3.200000e+01 : f32
    %103 = vector.broadcast %cst_27 : f32 to vector<32x1xf32>
    %104 = arith.divf %102, %103 : vector<32x1xf32>
    %105 = vector.broadcast %104 : vector<32x1xf32> to vector<32x32xf32>
    %106 = arith.subf %100, %105 : vector<32x32xf32>
    %107 = vector.broadcast %104 : vector<32x1xf32> to vector<32x32xf32>
    %108 = arith.subf %100, %107 : vector<32x32xf32>
    %109 = arith.mulf %106, %108 : vector<32x32xf32>
    %cst_28 = arith.constant dense<0.000000e+00> : vector<32xf32>
    %110 = vector.multi_reduction <add>, %109, %cst_28 [1] : vector<32x32xf32> to vector<32xf32>
    %111 = vector.shape_cast %110 : vector<32xf32> to vector<32x1xf32>
    %cst_29 = arith.constant 3.200000e+01 : f32
    %112 = vector.broadcast %cst_29 : f32 to vector<32x1xf32>
    %113 = arith.divf %111, %112 : vector<32x1xf32>
    %114 = vector.broadcast %104 : vector<32x1xf32> to vector<32x32xf32>
    %115 = arith.subf %100, %114 : vector<32x32xf32>
    %cst_30 = arith.constant 9.99999974E-6 : f32
    %116 = vector.broadcast %cst_30 : f32 to vector<32x1xf32>
    %117 = arith.addf %113, %116 : vector<32x1xf32>
    %118 = math.rsqrt %117 : vector<32x1xf32>
    %119 = vector.broadcast %118 : vector<32x1xf32> to vector<32x32xf32>
    %120 = arith.mulf %115, %119 : vector<32x32xf32>
    %121 = vector.broadcast %3 : vector<1x32xf32> to vector<32x32xf32>
    %122 = arith.mulf %120, %121 : vector<32x32xf32>
    %123 = vector.broadcast %4 : vector<1x32xf32> to vector<32x32xf32>
    %124 = arith.addf %122, %123 : vector<32x32xf32>
    %125 = arith.truncf %124 : vector<32x32xf32> to vector<32x32xbf16>
    %c0_31 = arith.constant 0 : index
    %c0_32 = arith.constant 0 : index
    %126 = vector.load %arg7[%c0_31, %c0_32] : memref<32x64xbf16, #tpu.memory_space<vmem>>, vector<32x64xbf16>
    %cst_33 = arith.constant dense<0.000000e+00> : vector<32x64xf32>
    %127 = tpu.matmul %125, %126, %cst_33 {dimension_numbers = #tpu.dot_dimension_numbers<[1], [0], [0], [1], [0, 0, 1, 1], [], []>} : vector<32x32xbf16>, vector<32x64xbf16>, vector<32x64xf32> -> vector<32x64xf32>
    %128 = vector.broadcast %5 : vector<1x64xf32> to vector<32x64xf32>
    %129 = arith.addf %127, %128 : vector<32x64xf32>
    %cst_34 = arith.constant 0.000000e+00 : f32
    %130 = vector.broadcast %cst_34 : f32 to vector<32x64xf32>
    %131 = arith.maximumf %129, %130 : vector<32x64xf32>
    %132 = arith.truncf %131 : vector<32x64xf32> to vector<32x64xbf16>
    %c0_35 = arith.constant 0 : index
    %c0_36 = arith.constant 0 : index
    %133 = vector.load %arg8[%c0_35, %c0_36] : memref<64x32xbf16, #tpu.memory_space<vmem>>, vector<64x32xbf16>
    %cst_37 = arith.constant dense<0.000000e+00> : vector<32x32xf32>
    %134 = tpu.matmul %132, %133, %cst_37 {dimension_numbers = #tpu.dot_dimension_numbers<[1], [0], [0], [1], [0, 0, 1, 1], [], []>} : vector<32x64xbf16>, vector<64x32xbf16>, vector<32x32xf32> -> vector<32x32xf32>
    %135 = vector.broadcast %6 : vector<1x32xf32> to vector<32x32xf32>
    %136 = arith.addf %134, %135 : vector<32x32xf32>
    %137 = arith.addf %124, %136 : vector<32x32xf32>
    %cst_38 = arith.constant dense<0.000000e+00> : vector<32xf32>
    %138 = vector.multi_reduction <add>, %137, %cst_38 [1] : vector<32x32xf32> to vector<32xf32>
    %139 = vector.shape_cast %138 : vector<32xf32> to vector<32x1xf32>
    %cst_39 = arith.constant 3.200000e+01 : f32
    %140 = vector.broadcast %cst_39 : f32 to vector<32x1xf32>
    %141 = arith.divf %139, %140 : vector<32x1xf32>
    %142 = vector.broadcast %141 : vector<32x1xf32> to vector<32x32xf32>
    %143 = arith.subf %137, %142 : vector<32x32xf32>
    %144 = vector.broadcast %141 : vector<32x1xf32> to vector<32x32xf32>
    %145 = arith.subf %137, %144 : vector<32x32xf32>
    %146 = arith.mulf %143, %145 : vector<32x32xf32>
    %cst_40 = arith.constant dense<0.000000e+00> : vector<32xf32>
    %147 = vector.multi_reduction <add>, %146, %cst_40 [1] : vector<32x32xf32> to vector<32xf32>
    %148 = vector.shape_cast %147 : vector<32xf32> to vector<32x1xf32>
    %cst_41 = arith.constant 3.200000e+01 : f32
    %149 = vector.broadcast %cst_41 : f32 to vector<32x1xf32>
    %150 = arith.divf %148, %149 : vector<32x1xf32>
    %151 = vector.broadcast %141 : vector<32x1xf32> to vector<32x32xf32>
    %152 = arith.subf %137, %151 : vector<32x32xf32>
    %cst_42 = arith.constant 9.99999974E-6 : f32
    %153 = vector.broadcast %cst_42 : f32 to vector<32x1xf32>
    %154 = arith.addf %150, %153 : vector<32x1xf32>
    %155 = math.rsqrt %154 : vector<32x1xf32>
    %156 = vector.broadcast %155 : vector<32x1xf32> to vector<32x32xf32>
    %157 = arith.mulf %152, %156 : vector<32x32xf32>
    %158 = vector.broadcast %7 : vector<1x32xf32> to vector<32x32xf32>
    %159 = arith.mulf %157, %158 : vector<32x32xf32>
    %160 = vector.broadcast %8 : vector<1x32xf32> to vector<32x32xf32>
    %161 = arith.addf %159, %160 : vector<32x32xf32>
    %162 = vector.shape_cast %161 : vector<32x32xf32> to vector<2x16x32xf32>
    %cst_43 = arith.constant dense<0.000000e+00> : vector<2x32xf32>
    %163 = vector.multi_reduction <add>, %162, %cst_43 [1] : vector<2x16x32xf32> to vector<2x32xf32>
    %cst_44 = arith.constant 1.600000e+01 : f32
    %164 = vector.broadcast %cst_44 : f32 to vector<2x32xf32>
    %165 = arith.divf %163, %164 : vector<2x32xf32>
    %166 = arith.truncf %165 : vector<2x32xf32> to vector<2x32xbf16>
    %c0_45 = arith.constant 0 : index
    %c0_46 = arith.constant 0 : index
    %167 = vector.load %arg9[%c0_45, %c0_46] : memref<32x64xbf16, #tpu.memory_space<vmem>>, vector<32x64xbf16>
    %cst_47 = arith.constant dense<0.000000e+00> : vector<2x64xf32>
    %168 = tpu.matmul %166, %167, %cst_47 {dimension_numbers = #tpu.dot_dimension_numbers<[1], [0], [0], [1], [0, 0, 1, 1], [], []>} : vector<2x32xbf16>, vector<32x64xbf16>, vector<2x64xf32> -> vector<2x64xf32>
    %169 = vector.broadcast %9 : vector<1x64xf32> to vector<2x64xf32>
    %170 = arith.addf %168, %169 : vector<2x64xf32>
    %cst_48 = arith.constant 0.000000e+00 : f32
    %171 = vector.broadcast %cst_48 : f32 to vector<2x64xf32>
    %172 = arith.maximumf %170, %171 : vector<2x64xf32>
    %173 = arith.truncf %172 : vector<2x64xf32> to vector<2x64xbf16>
    %c0_49 = arith.constant 0 : index
    %c0_50 = arith.constant 0 : index
    %174 = vector.load %arg10[%c0_49, %c0_50] : memref<64x32xbf16, #tpu.memory_space<vmem>>, vector<64x32xbf16>
    %cst_51 = arith.constant dense<0.000000e+00> : vector<2x32xf32>
    %175 = tpu.matmul %173, %174, %cst_51 {dimension_numbers = #tpu.dot_dimension_numbers<[1], [0], [0], [1], [0, 0, 1, 1], [], []>} : vector<2x64xbf16>, vector<64x32xbf16>, vector<2x32xf32> -> vector<2x32xf32>
    %176 = vector.broadcast %10 : vector<1x32xf32> to vector<2x32xf32>
    %177 = arith.addf %175, %176 : vector<2x32xf32>
    %cst_52 = arith.constant 0.000000e+00 : f32
    %178 = vector.broadcast %cst_52 : f32 to vector<2x32xf32>
    %179 = arith.maximumf %177, %178 : vector<2x32xf32>
    %180 = arith.truncf %179 : vector<2x32xf32> to vector<2x32xbf16>
    %c0_53 = arith.constant 0 : index
    %c0_54 = arith.constant 0 : index
    %181 = vector.load %arg11[%c0_53, %c0_54] : memref<32x128xbf16, #tpu.memory_space<vmem>>, vector<32x128xbf16>
    %cst_55 = arith.constant dense<0.000000e+00> : vector<2x128xf32>
    %182 = tpu.matmul %180, %181, %cst_55 {dimension_numbers = #tpu.dot_dimension_numbers<[1], [0], [0], [1], [0, 0, 1, 1], [], []>} : vector<2x32xbf16>, vector<32x128xbf16>, vector<2x128xf32> -> vector<2x128xf32>
    %183 = vector.broadcast %11 : vector<1x128xf32> to vector<2x128xf32>
    %184 = arith.addf %182, %183 : vector<2x128xf32>
    %c0_56 = arith.constant 0 : index
    %c0_57 = arith.constant 0 : index
    %185 = vector.load %arg13[%c0_56, %c0_57] : memref<2x128xf32, #tpu.memory_space<vmem>>, vector<2x128xf32>
    tpu.vector_store %arg13[%c0_56, %c0_57], %184 {strides = array<i32>} : memref<2x128xf32, #tpu.memory_space<vmem>>, vector<2x128xf32>,
    return
  }
  func.func @transform_0(%arg0: i32) -> (i32, i32, i32) {
    %c0_i32 = arith.constant 0 : i32
    %c0_i32_0 = arith.constant 0 : i32
    %c0_i32_1 = arith.constant 0 : i32
    return %arg0, %c0_i32, %c0_i32_0 : i32, i32, i32
  }
  func.func @transform_1(%arg0: i32) -> (i32, i32) {
    %c0_i32 = arith.constant 0 : i32
    %c0_i32_0 = arith.constant 0 : i32
    return %arg0, %c0_i32 : i32, i32
  }
  func.func @transform_2(%arg0: i32) -> (i32, i32) {
    %c0_i32 = arith.constant 0 : i32
    %c0_i32_0 = arith.constant 0 : i32
    %c0_i32_1 = arith.constant 0 : i32
    return %c0_i32, %c0_i32_0 : i32, i32
  }
  func.func @transform_3(%arg0: i32) -> (i32, i32) {
    %c0_i32 = arith.constant 0 : i32
    %c0_i32_0 = arith.constant 0 : i32
    %c0_i32_1 = arith.constant 0 : i32
    return %c0_i32, %c0_i32_0 : i32, i32
  }
  func.func @transform_4(%arg0: i32) -> (i32, i32) {
    %c0_i32 = arith.constant 0 : i32
    %c0_i32_0 = arith.constant 0 : i32
    %c0_i32_1 = arith.constant 0 : i32
    return %c0_i32, %c0_i32_0 : i32, i32
  }
  func.func @transform_5(%arg0: i32) -> (i32, i32) {
    %c0_i32 = arith.constant 0 : i32
    %c0_i32_0 = arith.constant 0 : i32
    %c0_i32_1 = arith.constant 0 : i32
    return %c0_i32, %c0_i32_0 : i32, i32
  }
  func.func @transform_6(%arg0: i32) -> (i32, i32) {
    %c0_i32 = arith.constant 0 : i32
    %c0_i32_0 = arith.constant 0 : i32
    %c0_i32_1 = arith.constant 0 : i32
    return %c0_i32, %c0_i32_0 : i32, i32
  }
  func.func @transform_7(%arg0: i32) -> (i32, i32) {
    %c0_i32 = arith.constant 0 : i32
    %c0_i32_0 = arith.constant 0 : i32
    %c0_i32_1 = arith.constant 0 : i32
    return %c0_i32, %c0_i32_0 : i32, i32
  }
  func.func @transform_8(%arg0: i32) -> (i32, i32) {
    %c0_i32 = arith.constant 0 : i32
    %c0_i32_0 = arith.constant 0 : i32
    %c0_i32_1 = arith.constant 0 : i32
    return %c0_i32, %c0_i32_0 : i32, i32
  }
  func.func @transform_9(%arg0: i32) -> (i32, i32) {
    %c0_i32 = arith.constant 0 : i32
    %c0_i32_0 = arith.constant 0 : i32
    %c0_i32_1 = arith.constant 0 : i32
    return %c0_i32, %c0_i32_0 : i32, i32
  }
  func.func @transform_10(%arg0: i32) -> (i32, i32) {
    %c0_i32 = arith.constant 0 : i32
    %c0_i32_0 = arith.constant 0 : i32
    %c0_i32_1 = arith.constant 0 : i32
    return %c0_i32, %c0_i32_0 : i32, i32
  }
  func.func @transform_11(%arg0: i32) -> (i32, i32) {
    %c0_i32 = arith.constant 0 : i32
    %c0_i32_0 = arith.constant 0 : i32
    %c0_i32_1 = arith.constant 0 : i32
    return %c0_i32, %c0_i32_0 : i32, i32
  }
  func.func @transform_12(%arg0: i32) -> (i32, i32) {
    %c0_i32 = arith.constant 0 : i32
    %c0_i32_0 = arith.constant 0 : i32
    return %arg0, %c0_i32 : i32, i32
  }
}

</mosaic_0001>

<bundles_post_ra>
// kernel: multi_scale_transformer_forward.1
= control target key start
LH: loop header
LB: loop body
LE: loop exit
PB: predicated region body
PF: predicated region fallthrough
CT: control target
= control target key end

     0   :  { %vm86_vm0 = vcmask 1043456   ;;  %vm79_vm1 = vcmask 326656   ;;  %s3131_s0 = inlined_call_operand.vmem [shape: bf16[2,16,40], index: 0, kind: input, shape index: {}]   ;;  %s3132_s1 = inlined_call_operand.vmem [shape: f32[2,16], index: 1, kind: input, shape index: {}]   ;;  %s3133_s2 = inlined_call_operand.vmem [shape: bf16[40,32], index: 2, kind: input, shape index: {}]   ;;  %s3134_s3 = inlined_call_operand.vmem [shape: f32[16,32], index: 3, kind: input, shape index: {}]   ;;  %s3135_s4 = inlined_call_operand.vmem [shape: bf16[32,96], index: 4, kind: input, shape index: {}]   ;;  %s3136_s5 = inlined_call_operand.vmem [shape: bf16[32,32], index: 5, kind: input, shape index: {}]   ;;  %s3137_s6 = inlined_call_operand.vmem [shape: bf16[32,64], index: 6, kind: input, shape index: {}]   ;;  %s3138_s7 = inlined_call_operand.vmem [shape: bf16[64,32], index: 7, kind: input, shape index: {}]   ;;  %s3139_s8 = inlined_call_operand.vmem [shape: bf16[32,64], index: 8, kind: input, shape index: {}]   ;;  %s3140_s9 = inlined_call_operand.vmem [shape: bf16[64,32], index: 9, kind: input, shape index: {}]   ;;  %s3141_s10 = inlined_call_operand.vmem [shape: bf16[32,128], index: 10, kind: input, shape index: {}]   ;;  %s3142_s11 = inlined_call_operand.vmem [shape: f32[16,128], index: 11, kind: input, shape index: {}]   ;;  %s3143_s12 = inlined_call_operand.hbm [shape: f32[2,128], index: 12, kind: output, shape index: {}]  }
   0x1   :  { %v2409_v0 = vld [vmem:[%s3133_s2 + $0x10] ss:$0 sps:$4 sm:$0xff]   ;;  %v2410_v1 = vld [vmem:[%s3133_s2 + $0x8] sm:$0xff]   ;;  %v2412_v3 = vld [vmem:[%s3131_s0] sm:$0xff]  }
   0x2   :  { %2336 = vmatprep.subr.msk.bf16.mxu0 %vm86_vm0, %v2409_v0  ;;  %v88_v2 = vsel %vm86_vm0, %v2409_v0, 0  ;;  %v2411_v4 = vld [vmem:[%s3133_s2] sm:$0xff]   ;;  %2172 = vmatprep.mubr.msk.bf16.mxu0 %vm79_vm1, %v2412_v3  ;;  %v2413_v5 = vld [vmem:[%s3131_s0 + $0x8] sm:$0xff]  }
   0x3   :  { %2167 = vmatpush3.bf16.msra.mxu0 %v88_v2 }
   0x4   :  { %2168 = vmatprep.subr.bf16.mxu0 %v2410_v1 }
   0x7   :  { %2169 = vmatpush3.bf16.msra.mxu0 %v2410_v1 }
   0x8   :  { %2170 = vmatprep.subr.bf16.mxu0 %v2411_v4 }
   0xb   :  { %2171 = vmatpush3.bf16.msra.mxu0 %v2411_v4 }
   0xe   :  { %2173 = vmatmul.mubr.msk.bf16.vlgmr.msra.gmra.mxu0 %vm79_vm1, %v2413_v5 }
   0xf   :  { %17 = vsyncpa [#allocation3], 0  ;;  %v2414_v6 = vld [vmem:[%s3135_s4 + $0x8] sm:$0xff]   ;;  %v2415_v7 = vld [vmem:[%s3135_s4] sm:$0xff]   ;;  %vm203_vm2 = vcmask 261120   ;;  %v187_v56 = vlaneseq  ;;  %s2543_s19 = smov 112  }
  0x10   :  { %2176 = vmatprep.subr.bf16.mxu1 %v2414_v6  ;;  %v139_v8 = vld [vmem:[%s3134_s3] sm:$0xff]  ;;  %v140_v12 = vld [vmem:[%s3134_s3 + $0x8] sm:$0xff]  ;;  %s2544_s20 = smov 120   ;;  %vm2546_vm3 = vmmov 0   ;;  %s2547_s21 = smov 104   ;;  %vm312_vm4 = vcmask 64512  }
  0x11   :  { %2177 = vmatpush3.bf16.msra.mxu1 %v2414_v6  ;;  %v2661_v57 = vshrl.u32 %v187_v56, 7  ;;  %v43_v60 = vld [vmem:[%s3142_s11] sm:$0xff]  ;;  %v2545_v6 = vmov 0.0   ;;  %s2548_s22 = smov 96   ;;  %s2549_s23 = smov 64   ;;  %vm775_vm5 = vcmask 130048  }
  0x12   :  { %2178 = vmatprep.subr.bf16.mxu1 %v2415_v7  ;;  %2190 = vmatprep.subr.bf16.mxu0 %v2545_v6  ;;  %s2552_s28 = smov 16   ;;  %s2553_s13 = smov 24   ;;  %vm1392_vm6 = vcmask 195584   ;;  %vm1666_vm7 = vcmask 523264   ;;  %vm1829_vm8 = vcmask 1041409  }
  0x13   :  { %v2664_v59 = vsub.s32 0, %v2661_v57  ;;  %2192 = vmatprep.mubr.msk.bf16.mxu0 %vm2546_vm3, %v2545_v6  ;;  %s2554_s16 = smov [#allocation2]  }
  0x14   :  { %s2040_s2 = sshll.u32 %s2554_s16, 4  ;;  %s2041_s2 = int_to_ptr.vmem [resolvable:$true] %s2040_s2 }
  0x15   :  { %2179 = vmatpush3.bf16.msra.mxu1 %v2415_v7  ;;  %v190_v63 = vrot.slane %v43_v60, %v2664_v59  ;;  %v307_v60 = vld [vmem:[%s3132_s1] sm:$0x3]  ;;  %s2551_s1 = smov 8   ;;  %p2526_p1 = scmp.lt.s32.totalorder %s2041_s2, %s2041_s2 }
  0x16   :  { %2184 = vmatprep.subr.bf16.mxu1 %v2545_v6 }
  0xce   :  { %v2174_v9 = vpop.f32.mrf.mxu0 }
  0xcf   :  { %v143_v10 = vadd.f32 %v2174_v9, %v139_v8 }
  0xd0   :  { %v124_v11 = vpop.f32.mrf.mxu0 }
  0xd1   :  { %v147_v13 = vmul.f32 %v143_v10, %v143_v10  ;;  %v141_v14 = vadd.f32 %v139_v8, %v124_v11 }
  0xd2   :  { %v2175_v15 = vpop.f32.mrf.mxu0 }
  0xd3   :  { %v151_v16 = vmul.f32 %v147_v13, %v143_v10  ;;  %v145_v17 = vmul.f32 %v141_v14, %v141_v14  ;;  %v144_v18 = vadd.f32 %v2175_v15, %v140_v12 }
  0xd4   :  { %v127_v19 = vpop.f32.mrf.mxu0 }
  0xd5   :  { %v155_v20 = vmul.f32 0.044715, %v151_v16  ;;  %v149_v21 = vmul.f32 %v145_v17, %v141_v14  ;;  %v148_v22 = vmul.f32 %v144_v18, %v144_v18  ;;  %v142_v23 = vadd.f32 %v140_v12, %v127_v19 }
  0xd7   :  { %v159_v24 = vadd.f32 %v155_v20, %v143_v10  ;;  %v153_v25 = vmul.f32 0.044715, %v149_v21  ;;  %v152_v26 = vmul.f32 %v148_v22, %v144_v18  ;;  %v146_v27 = vmul.f32 %v142_v23, %v142_v23 }
  0xd9   :  { %v163_v28 = vmul.f32 0.7978846, %v159_v24  ;;  %v157_v29 = vadd.f32 %v153_v25, %v141_v14  ;;  %v156_v30 = vmul.f32 0.044715, %v152_v26  ;;  %v150_v31 = vmul.f32 %v146_v27, %v142_v23 }
  0xdb   :  { %v161_v32 = vmul.f32 0.7978846, %v157_v29  ;;  %v160_v33 = vadd.f32 %v156_v30, %v144_v18  ;;  %v154_v34 = vmul.f32 0.044715, %v150_v31  ;;  %2432 = vtanh.f32 %v163_v28 }
  0xdd   :  { %v164_v35 = vmul.f32 0.7978846, %v160_v33  ;;  %v158_v36 = vadd.f32 %v154_v34, %v142_v23  ;;  %2434 = vtanh.f32 %v161_v32 }
  0xdf   :  { %2436 = vtanh.f32 %v164_v35  ;;  %v162_v37 = vmul.f32 0.7978846, %v158_v36 }
  0xe1   :  { %2438 = vtanh.f32 %v162_v37 }
  0xe8   :  { %v2433_v38 = vpop.eup %2432 }
  0xe9   :  { %v171_v42 = vadd.f32 1.0, %v2433_v38 }
  0xea   :  { %v2435_v39 = vpop.eup %2434 }
  0xeb   :  { %v169_v40 = vadd.f32 1.0, %v2435_v39  ;;  %v175_v48 = vmul.f32 0.5, %v171_v42 }
  0xec   :  { %v2437_v41 = vpop.eup %2436 }
  0xed   :  { %v172_v43 = vadd.f32 1.0, %v2437_v41  ;;  %v173_v47 = vmul.f32 0.5, %v169_v40  ;;  %v2653_v53 = vmul.f32 %v175_v48, %v143_v10 }
  0xee   :  { %v2439_v44 = vpop.eup %2438 }
  0xef   :  { %v176_v45 = vmul.f32 0.5, %v172_v43  ;;  %v170_v46 = vadd.f32 1.0, %v2439_v44  ;;  %v2649_v51 = vmul.f32 %v173_v47, %v141_v14 }
  0xf1   :  { %v174_v49 = vmul.f32 0.5, %v170_v46  ;;  %v2647_v50 = vmul.f32 %v176_v45, %v144_v18 }
  0xf3   :  { %v2651_v52 = vmul.f32 %v174_v49, %v142_v23  ;;  %v182_v55 = vpack.c.bf16 %v2647_v50, %v2653_v53 }
  0xf5   :  { %v181_v54 = vpack.c.bf16 %v2651_v52, %v2649_v51 }
  0xf7   :  { %2180 = vmatprep.mubr.msk.bf16.mxu1 %vm203_vm2, %v181_v54 }
  0xf8   :  { %2181 = vmatmul.mubr.msk.bf16.vlgmr.msra.gmra.mxu1 %vm203_vm2, %v182_v55  ;;  %v2550_v55 = vmov 1966171168  }
  0xf9   :  { %2186 = vmatprep.mubr.msk.bf16.mxu1 %vm2546_vm3, %v2545_v6  ;;  %v728_v56 = vunpack.c.l.s4 %v2550_v55 }
 0x1b8   :  { %v2182_v58 = vpop.f32.mrf.mxu1 }
 0x1b9   :  { %v253_v5 = vadd.f32 %v2182_v58, %v190_v63  ;;  %v729_v58 = vunpack.c.0.s8 %v728_v56 }
 0x1ba   :  { %v244_v61 = vpop.f32.mrf.mxu1 }
 0x1bb   :  { %v245_v1 = vadd.f32 %v244_v61, %v190_v63  ;;  %v308_v61 = vmul.f32 -1e+09, %v307_v60 }
 0x1bc   :  { %v2183_v62 = vpop.f32.mrf.mxu1 }
 0x1bd   :  { %v256_v3 = vadd.f32 %v2183_v62, %v190_v63  ;;  %v732_v62 = vsub.s32 %v729_v58, %v2661_v57 }
 0x1be   :  { %v247_v0 = vpop.f32.mrf.mxu1 }
 0x1bf   :  { %v248_v2 = vadd.f32 %v247_v0, %v190_v63  ;;  %v2364_v7 = vpack.i.bf16 %v256_v3, %v253_v5  ;;  %v2676_v8 = vpack.c.bf16 %v256_v3, %v253_v5  ;;  %v733_v63 = vrot.slane %v308_v61, %v732_v62 }
 0x1c1   :  { %v2359_v4 = vpack.i.bf16 %v248_v2, %v245_v1  ;;  %v299_v9 = vpack.c.bf16 %v248_v2, %v245_v1  ;;  %v734_v0 = vcombine.high %v733_v63, %v733_v63  ;;  %v741_v2 = vrot.slane %v733_v63, %v732_v62 }
 0x1c3   :  { %2360 = vrot.lane.b32.xlu1 %v2359_v4, %s2543_s19  ;;  %2350 = vrot.lane.b32.xlu0 %v2359_v4, %s2544_s20  ;;  %v748_v1 = vrot.slane %v734_v0, %v732_v62  ;;  %v2762_v5 = vrot.slane %v741_v2, %v2664_v59 }
 0x1c5   :  { %v2759_v3 = vrot.slane %v748_v1, %v2664_v59 }
 0x1c7   :  { %2365 = vrot.lane.b32.xlu1 %v2364_v7, %s2543_s19  ;;  %2355 = vrot.lane.b32.xlu0 %v2364_v7, %s2544_s20 }
 0x1cb   :  { %2375 = vrot.lane.b32.xlu1 %v2364_v7, %s2547_s21  ;;  %2370 = vrot.lane.b32.xlu0 %v2359_v4, %s2547_s21 }
 0x1cf   :  { %361 = vrot.lane.b32.xlu1 %v2676_v8, %s2548_s22  ;;  %310 = vrot.lane.b32.xlu0 %v299_v9, %s2548_s22 }
 0x235   :  { %v2361_v10 = vpop.permute.xlu1 %2360  ;;  %v2351_v11 = vpop.permute.xlu0 %2350 }
 0x236   :  { %v2353_v12 = vunpack.i.h.bf16 %v2351_v11  ;;  %v2352_v13 = vunpack.i.l.bf16 %v2351_v11  ;;  %v2363_v14 = vunpack.i.h.bf16 %v2361_v10  ;;  %v2362_v15 = vunpack.i.l.bf16 %v2361_v10 }
 0x238   :  { %v2681_v16 = vpack.c.bf16 %v2353_v12, %v2352_v13  ;;  %v2685_v21 = vpack.c.bf16 %v2363_v14, %v2362_v15 }
 0x239   :  { %v2366_v17 = vpop.permute.xlu1 %2365  ;;  %v2356_v18 = vpop.permute.xlu0 %2355 }
 0x23a   :  { %v2358_v19 = vunpack.i.h.bf16 %v2356_v18  ;;  %v2357_v20 = vunpack.i.l.bf16 %v2356_v18  ;;  %411 = vrot.lane.b32.xlu0 %v2681_v16, %s2548_s22  ;;  %v2368_v22 = vunpack.i.h.bf16 %v2366_v17  ;;  %v2367_v23 = vunpack.i.l.bf16 %v2366_v17 }
 0x23c   :  { %v2687_v24 = vpack.c.bf16 %v2358_v19, %v2357_v20  ;;  %v2693_v29 = vpack.c.bf16 %v2368_v22, %v2367_v23 }
 0x23d   :  { %v2376_v25 = vpop.permute.xlu1 %2375  ;;  %v2371_v26 = vpop.permute.xlu0 %2370 }
 0x23e   :  { %v2373_v27 = vunpack.i.h.bf16 %v2371_v26  ;;  %v2372_v28 = vunpack.i.l.bf16 %v2371_v26  ;;  %461 = vrot.lane.b32.xlu1 %v2687_v24, %s2548_s22  ;;  %511 = vrot.lane.b32.xlu0 %v2685_v21, %s2548_s22  ;;  %v2378_v30 = vunpack.i.h.bf16 %v2376_v25  ;;  %v2377_v31 = vunpack.i.l.bf16 %v2376_v25 }
 0x240   :  { %v2695_v32 = vpack.c.bf16 %v2373_v27, %v2372_v28  ;;  %v2703_v37 = vpack.c.bf16 %v2378_v30, %v2377_v31 }
 0x241   :  { %v362_v33 = vpop.permute.xlu1 %361  ;;  %v311_v34 = vpop.permute.xlu0 %310 }
 0x242   :  { %v367_v35 = vsel %vm312_vm4, %v362_v33, 0  ;;  %v317_v36 = vsel %vm312_vm4, %v311_v34, 0  ;;  %561 = vrot.lane.b32.xlu1 %v2693_v29, %s2548_s22  ;;  %611 = vrot.lane.b32.xlu0 %v2695_v32, %s2548_s22 }
 0x243   :  { %2185 = vmatpush3.bf16.xpose.msra.mxu1 %v317_v36  ;;  %2191 = vmatpush3.bf16.xpose.msra.mxu0 %v367_v35 }
 0x244   :  { %2196 = vmatprep.subr.bf16.mxu1 %v2545_v6  ;;  %2202 = vmatprep.subr.bf16.mxu0 %v2545_v6 }
 0x246   :  { %661 = vrot.lane.b32.xlu1 %v2703_v37, %s2548_s22 }
 0x24a   :  { %2193 = vmatmul.mubr.msk.bf16.vlgmr.msra.gmra.mxu0 %vm312_vm4, %v2676_v8  ;;  %960 = vrot.lane.b32.xlu1 %v299_v9, %s2549_s23 }
 0x24b   :  { %2187 = vmatmul.mubr.msk.bf16.vlgmr.msra.gmra.mxu1 %vm312_vm4, %v299_v9  ;;  %2204 = vmatprep.mubr.msk.bf16.mxu0 %vm2546_vm3, %v2545_v6 }
 0x24c   :  { %2198 = vmatprep.mubr.msk.bf16.mxu1 %vm2546_vm3, %v2545_v6 }
 0x2ac   :  { %v412_v38 = vpop.permute.xlu0 %411 }
 0x2ad   :  { %v417_v39 = vsel %vm312_vm4, %v412_v38, 0 }
 0x2ae   :  { %2197 = vmatpush3.bf16.xpose.msra.mxu1 %v417_v39 }
 0x2af   :  { %2208 = vmatprep.subr.bf16.mxu1 %v2545_v6 }
 0x2b0   :  { %v462_v40 = vpop.permute.xlu1 %461  ;;  %v512_v42 = vpop.permute.xlu0 %511 }
 0x2b1   :  { %v467_v41 = vsel %vm312_vm4, %v462_v40, 0  ;;  %v517_v43 = vsel %vm312_vm4, %v512_v42, 0 }
 0x2b2   :  { %2203 = vmatpush3.bf16.xpose.msra.mxu0 %v467_v41 }
 0x2b3   :  { %2214 = vmatprep.subr.bf16.mxu0 %v2545_v6 }
 0x2b4   :  { %v562_v44 = vpop.permute.xlu1 %561  ;;  %v612_v46 = vpop.permute.xlu0 %611 }
 0x2b5   :  { %2199 = vmatmul.mubr.msk.bf16.vlgmr.msra.gmra.mxu1 %vm312_vm4, %v2681_v16  ;;  %v567_v45 = vsel %vm312_vm4, %v562_v44, 0  ;;  %v617_v47 = vsel %vm312_vm4, %v612_v46, 0 }
 0x2b6   :  { %2209 = vmatpush3.bf16.xpose.msra.mxu1 %v517_v43  ;;  %2210 = vmatprep.mubr.msk.bf16.mxu1 %vm2546_vm3, %v2545_v6 }
 0x2b7   :  { %2220 = vmatprep.subr.bf16.mxu1 %v2545_v6 }
 0x2b8   :  { %v662_v48 = vpop.permute.xlu1 %661 }
 0x2b9   :  { %2205 = vmatmul.mubr.msk.bf16.vlgmr.msra.gmra.mxu0 %vm312_vm4, %v2687_v24  ;;  %v667_v49 = vsel %vm312_vm4, %v662_v48, 0 }
 0x2ba   :  { %2215 = vmatpush3.bf16.xpose.msra.mxu0 %v567_v45  ;;  %2216 = vmatprep.mubr.msk.bf16.mxu0 %vm2546_vm3, %v2545_v6 }
 0x2bb   :  { %2226 = vmatprep.subr.bf16.mxu0 %v2545_v6 }
 0x2bc   :  { %v961_v54 = vpop.permute.xlu1 %960 }
 0x2bd   :  { %2211 = vmatmul.mubr.msk.bf16.vlgmr.msra.gmra.mxu1 %vm312_vm4, %v2685_v21 }
 0x2be   :  { %2221 = vmatpush3.bf16.xpose.msra.mxu1 %v617_v47  ;;  %2222 = vmatprep.mubr.msk.bf16.mxu1 %vm2546_vm3, %v2545_v6 }
 0x2bf   :  { %2232 = vmatprep.subr.bf16.mxu1 %v2545_v6 }
 0x2c1   :  { %2217 = vmatmul.mubr.msk.bf16.vlgmr.msra.gmra.mxu0 %vm312_vm4, %v2693_v29 }
 0x2c2   :  { %2227 = vmatpush3.bf16.xpose.msra.mxu0 %v667_v49  ;;  %2228 = vmatprep.mubr.msk.bf16.mxu0 %vm2546_vm3, %v2545_v6 }
 0x2c3   :  { %2238 = vmatprep.subr.bf16.mxu0 %v2545_v6 }
 0x2c5   :  { %2223 = vmatmul.mubr.msk.bf16.vlgmr.msra.gmra.mxu1 %vm312_vm4, %v2695_v32 }
 0x2c6   :  { %2233 = vmatpush3.bf16.msra.mxu1 %v961_v54  ;;  %2234 = vmatprep.mubr.msk.bf16.mxu1 %vm2546_vm3, %v2545_v6 }
 0x2c7   :  { %2244 = vmatprep.subr.bf16.mxu1 %v2545_v6 }
 0x2c9   :  { %2229 = vmatmul.mubr.msk.bf16.vlgmr.msra.gmra.mxu0 %vm312_vm4, %v2703_v37 }
 0x2ca   :  { %2240 = vmatprep.mubr.msk.bf16.mxu0 %vm2546_vm3, %v2545_v6 }
 0x30a   :  { %v403_v4 = vpop.f32.mrf.mxu0 }
 0x30b   :  { %v353_v7 = vpop.f32.mrf.mxu1  ;;  %v712_v9 = vmul.f32 0.35355338, %v403_v4 }
 0x30c   :  { %v710_v10 = vmul.f32 0.35355338, %v353_v7  ;;  %v2194_v11 = vpop.f32.mrf.mxu0 }
 0x30d   :  { %v2188_v12 = vpop.f32.mrf.mxu1  ;;  %v2765_v13 = vadd.f32 %v2759_v3, %v712_v9 }
 0x30e   :  { %v406_v14 = vpop.f32.mrf.mxu0  ;;  %v2770_v19 = vadd.f32 %v2762_v5, %v710_v10 }
 0x30f   :  { %v356_v15 = vpop.f32.mrf.mxu1  ;;  %v713_v17 = vmul.f32 0.35355338, %v406_v14  ;;  %v782_v18 = vsel %vm775_vm5, %v2765_v13, -inf }
 0x310   :  { %v711_v20 = vmul.f32 0.35355338, %v356_v15  ;;  %v2195_v22 = vpop.f32.mrf.mxu0  ;;  %783 = vmax.xlane.f32.xlu0 %v782_v18  ;;  %v776_v26 = vsel %vm775_vm5, %v2770_v19, -inf }
 0x311   :  { %v2189_v23 = vpop.f32.mrf.mxu1  ;;  %v2778_v27 = vadd.f32 %v2759_v3, %v713_v17 }
 0x312   :  { %v2773_v25 = vadd.f32 %v2762_v5, %v711_v20 }
 0x313   :  { %v785_v30 = vsel %vm775_vm5, %v2778_v27, -inf }
 0x314   :  { %777 = vmax.xlane.f32.xlu0 %v776_v26  ;;  %v779_v28 = vsel %vm775_vm5, %v2773_v25, -inf }
 0x315   :  { %780 = vmax.xlane.f32.xlu1 %v779_v28 }
 0x318   :  { %786 = vmax.xlane.f32.xlu0 %v785_v30 }
 0x375   :  { %v453_v31 = vpop.f32.mrf.mxu1 }
 0x376   :  { %v714_v34 = vmul.f32 0.35355338, %v453_v31 }
 0x377   :  { %v2200_v33 = vpop.f32.mrf.mxu1 }
 0x378   :  { %v2788_v44 = vadd.f32 %v2762_v5, %v714_v34 }
 0x379   :  { %v456_v35 = vpop.f32.mrf.mxu1  ;;  %v503_v36 = vpop.f32.mrf.mxu0 }
 0x37a   :  { %v716_v38 = vmul.f32 0.35355338, %v503_v36  ;;  %v715_v45 = vmul.f32 0.35355338, %v456_v35  ;;  %v788_v58 = vsel %vm775_vm5, %v2788_v44, -inf }
 0x37b   :  { %v2201_v39 = vpop.f32.mrf.mxu1  ;;  %v2206_v40 = vpop.f32.mrf.mxu0 }
 0x37c   :  { %v2785_v41 = vadd.f32 %v2759_v3, %v716_v38  ;;  %v2800_v63 = vadd.f32 %v2762_v5, %v715_v45 }
 0x37d   :  { %v506_v42 = vpop.f32.mrf.mxu0  ;;  %v553_v43 = vpop.f32.mrf.mxu1 }
 0x37e   :  { %v717_v46 = vmul.f32 0.35355338, %v506_v42  ;;  %v794_v47 = vsel %vm775_vm5, %v2785_v41, -inf  ;;  %v718_v60 = vmul.f32 0.35355338, %v553_v43  ;;  %v791_v12 = vsel %vm775_vm5, %v2800_v63, -inf }
 0x37f   :  { %v2207_v48 = vpop.f32.mrf.mxu0  ;;  %795 = vmax.xlane.f32.xlu1 %v794_v47  ;;  %v2212_v49 = vpop.f32.mrf.mxu1 }
 0x380   :  { %v2793_v54 = vadd.f32 %v2759_v3, %v717_v46  ;;  %v2810_v14 = vadd.f32 %v2762_v5, %v718_v60 }
 0x381   :  { %v556_v55 = vpop.f32.mrf.mxu1  ;;  %v603_v56 = vpop.f32.mrf.mxu0 }
 0x382   :  { %v720_v61 = vmul.f32 0.35355338, %v603_v56  ;;  %v797_v62 = vsel %vm775_vm5, %v2793_v54, -inf  ;;  %v719_v4 = vmul.f32 0.35355338, %v556_v55  ;;  %v800_v31 = vsel %vm775_vm5, %v2810_v14, -inf }
 0x383   :  { %v2218_v0 = vpop.f32.mrf.mxu0  ;;  %798 = vmax.xlane.f32.xlu0 %v797_v62  ;;  %789 = vmax.xlane.f32.xlu1 %v788_v58  ;;  %v2213_v1 = vpop.f32.mrf.mxu1 }
 0x384   :  { %v2803_v2 = vadd.f32 %v2759_v3, %v720_v61  ;;  %v2816_v23 = vadd.f32 %v2762_v5, %v719_v4 }
 0x385   :  { %v606_v7 = vpop.f32.mrf.mxu0  ;;  %v653_v9 = vpop.f32.mrf.mxu1 }
 0x386   :  { %v721_v10 = vmul.f32 0.35355338, %v606_v7  ;;  %v806_v11 = vsel %vm775_vm5, %v2803_v2, -inf  ;;  %v722_v26 = vmul.f32 0.35355338, %v653_v9  ;;  %v803_v38 = vsel %vm775_vm5, %v2816_v23, -inf }
 0x387   :  { %v2219_v15 = vpop.f32.mrf.mxu0  ;;  %807 = vmax.xlane.f32.xlu1 %v806_v11  ;;  %792 = vmax.xlane.f32.xlu0 %v791_v12  ;;  %v2224_v17 = vpop.f32.mrf.mxu1 }
 0x388   :  { %v2813_v18 = vadd.f32 %v2759_v3, %v721_v10  ;;  %v2830_v43 = vadd.f32 %v2762_v5, %v722_v26 }
 0x389   :  { %v656_v20 = vpop.f32.mrf.mxu1  ;;  %v703_v22 = vpop.f32.mrf.mxu0 }
 0x38a   :  { %v724_v28 = vmul.f32 0.35355338, %v703_v22  ;;  %v809_v30 = vsel %vm775_vm5, %v2813_v18, -inf  ;;  %v723_v39 = vmul.f32 0.35355338, %v656_v20  ;;  %v812_v48 = vsel %vm775_vm5, %v2830_v43, -inf }
 0x38b   :  { %v2230_v33 = vpop.f32.mrf.mxu0  ;;  %810 = vmax.xlane.f32.xlu0 %v809_v30  ;;  %801 = vmax.xlane.f32.xlu1 %v800_v31  ;;  %v2225_v34 = vpop.f32.mrf.mxu1 }
 0x38c   :  { %v2823_v35 = vadd.f32 %v2759_v3, %v724_v28  ;;  %v2840_v49 = vadd.f32 %v2762_v5, %v723_v39 }
 0x38d   :  { %v706_v36 = vpop.f32.mrf.mxu0 }
 0x38e   :  { %v725_v40 = vmul.f32 0.35355338, %v706_v36  ;;  %v818_v42 = vsel %vm775_vm5, %v2823_v35, -inf  ;;  %v815_v55 = vsel %vm775_vm5, %v2840_v49, -inf }
 0x38f   :  { %v2231_v45 = vpop.f32.mrf.mxu0  ;;  %819 = vmax.xlane.f32.xlu1 %v818_v42  ;;  %804 = vmax.xlane.f32.xlu0 %v803_v38 }
 0x390   :  { %v2833_v46 = vadd.f32 %v2759_v3, %v725_v40 }
 0x392   :  { %v821_v47 = vsel %vm775_vm5, %v2833_v46, -inf }
 0x393   :  { %822 = vmax.xlane.f32.xlu0 %v821_v47  ;;  %813 = vmax.xlane.f32.xlu1 %v812_v48 }
 0x397   :  { %816 = vmax.xlane.f32.xlu0 %v815_v55 }
 0x399   :  { %v784_v3 = vpop.xlane.xlu0 %783 }
 0x39a   :  { %v826_v58 = vsub.f32 %v2765_v13, %v784_v3 }
 0x39c   :  { %v844_v61 = vmul.f32 1.442695, %v826_v58 }
 0x39d   :  { %v778_v5 = vpop.xlane.xlu0 %777 }
 0x39e   :  { %v824_v62 = vsub.f32 %v2770_v19, %v778_v5  ;;  %2440 = vpow2.f32 %v844_v61 }
 0x3a1   :  { %v787_v56 = vpop.xlane.xlu0 %786 }
 0x3a2   :  { %v827_v60 = vsub.f32 %v2778_v27, %v787_v56 }
 0x3a4   :  { %1054 = vrot.lane.b32.xlu1 %v2681_v16, %s2549_s23  ;;  %v781_v16 = vpop.xlane.xlu1 %780  ;;  %v846_v0 = vmul.f32 1.442695, %v827_v60 }
 0x3a6   :  { %2442 = vpow2.f32 %v846_v0 }
 0x3a8   :  { %1101 = vrot.lane.b32.xlu1 %v2687_v24, %s2549_s23  ;;  %v825_v24 = vsub.f32 %v2773_v25, %v781_v16 }
 0x3aa   :  { %v842_v1 = vmul.f32 1.442695, %v825_v24 }
 0x3ac   :  { %1195 = vrot.lane.b32.xlu1 %v2693_v29, %s2549_s23  ;;  %v840_v29 = vmul.f32 1.442695, %v824_v62 }
 0x3ad   :  { %1007 = vrot.lane.b32.xlu0 %v2676_v8, %s2549_s23  ;;  %v2858_v8 = vpop.eup %2440 }
 0x3ae   :  { %2444 = vpow2.f32 %v840_v29  ;;  %v878_v27 = vsel %vm775_vm5, %v2858_v8, 0.0 }
 0x3af   :  { %2446 = vpow2.f32 %v842_v1 }
 0x3b1   :  { %1148 = vrot.lane.b32.xlu0 %v2685_v21, %s2549_s23 }
 0x3b3   :  { %v2860_v21 = vpop.eup %2442 }
 0x3b4   :  { %v881_v19 = vsel %vm775_vm5, %v2860_v21, 0.0 }
 0x3bb   :  { %v2862_v13 = vpop.eup %2444 }
 0x3bc   :  { %v2868_v25 = vpop.eup %2446  ;;  %v872_v4 = vsel %vm775_vm5, %v2862_v13, 0.0 }
 0x3bd   :  { %v875_v7 = vsel %vm775_vm5, %v2868_v25, 0.0 }
 0x3d0   :  { %879 = vadd.xlane.f32.xlu1 %v878_v27  ;;  %882 = vadd.xlane.f32.xlu0 %v881_v19 }
 0x3d4   :  { %873 = vadd.xlane.f32.xlu1 %v872_v4  ;;  %876 = vadd.xlane.f32.xlu0 %v875_v7 }
 0x408   :  { %v796_v9 = vpop.xlane.xlu1 %795 }
 0x409   :  { %v830_v10 = vsub.f32 %v2785_v41, %v796_v9 }
 0x40b   :  { %v852_v11 = vmul.f32 1.442695, %v830_v10 }
 0x40c   :  { %v790_v12 = vpop.xlane.xlu1 %789  ;;  %v799_v15 = vpop.xlane.xlu0 %798 }
 0x40d   :  { %2448 = vpow2.f32 %v852_v11  ;;  %v828_v17 = vsub.f32 %v2788_v44, %v790_v12  ;;  %v831_v20 = vsub.f32 %v2793_v54, %v799_v15 }
 0x40f   :  { %v848_v22 = vmul.f32 1.442695, %v828_v17  ;;  %v854_v26 = vmul.f32 1.442695, %v831_v20 }
 0x410   :  { %v808_v28 = vpop.xlane.xlu1 %807  ;;  %v793_v30 = vpop.xlane.xlu0 %792 }
 0x411   :  { %2450 = vpow2.f32 %v848_v22  ;;  %v834_v31 = vsub.f32 %v2803_v2, %v808_v28  ;;  %v829_v33 = vsub.f32 %v2800_v63, %v793_v30 }
 0x412   :  { %2452 = vpow2.f32 %v854_v26 }
 0x413   :  { %v860_v34 = vmul.f32 1.442695, %v834_v31  ;;  %v850_v41 = vmul.f32 1.442695, %v829_v33 }
 0x414   :  { %v802_v36 = vpop.xlane.xlu1 %801  ;;  %v811_v38 = vpop.xlane.xlu0 %810 }
 0x415   :  { %2454 = vpow2.f32 %v860_v34  ;;  %v832_v39 = vsub.f32 %v2810_v14, %v802_v36  ;;  %v835_v44 = vsub.f32 %v2813_v18, %v811_v38 }
 0x416   :  { %2456 = vpow2.f32 %v850_v41 }
 0x417   :  { %v856_v54 = vmul.f32 1.442695, %v832_v39  ;;  %v862_v40 = vmul.f32 1.442695, %v835_v44 }
 0x418   :  { %v820_v42 = vpop.xlane.xlu1 %819  ;;  %v805_v45 = vpop.xlane.xlu0 %804 }
 0x419   :  { %2458 = vpow2.f32 %v856_v54  ;;  %v838_v2 = vsub.f32 %v2823_v35, %v820_v42  ;;  %v833_v63 = vsub.f32 %v2816_v23, %v805_v45 }
 0x41a   :  { %v2883_v47 = vpop.eup %2448  ;;  %2460 = vpow2.f32 %v862_v40 }
 0x41b   :  { %v868_v48 = vmul.f32 1.442695, %v838_v2  ;;  %v858_v55 = vmul.f32 1.442695, %v833_v63  ;;  %v890_v14 = vsel %vm775_vm5, %v2883_v47, 0.0 }
 0x41c   :  { %v814_v3 = vpop.xlane.xlu1 %813  ;;  %891 = vadd.xlane.f32.xlu1 %v890_v14  ;;  %v823_v18 = vpop.xlane.xlu0 %822 }
 0x41d   :  { %2462 = vpow2.f32 %v868_v48  ;;  %v836_v5 = vsub.f32 %v2830_v43, %v814_v3  ;;  %v839_v56 = vsub.f32 %v2833_v46, %v823_v18 }
 0x41e   :  { %v2889_v58 = vpop.eup %2450  ;;  %2464 = vpow2.f32 %v858_v55 }
 0x41f   :  { %v2891_v23 = vpop.eup %2452  ;;  %v864_v35 = vmul.f32 1.442695, %v836_v5  ;;  %v870_v60 = vmul.f32 1.442695, %v839_v56  ;;  %v884_v16 = vsel %vm775_vm5, %v2889_v58, 0.0 }
 0x420   :  { %885 = vadd.xlane.f32.xlu1 %v884_v16  ;;  %v893_v61 = vsel %vm775_vm5, %v2891_v23, 0.0  ;;  %v817_v62 = vpop.xlane.xlu0 %816  ;;  %v1055_v30 = vpop.permute.xlu1 %1054 }
 0x421   :  { %2466 = vpow2.f32 %v864_v35  ;;  %894 = vadd.xlane.f32.xlu0 %v893_v61  ;;  %v837_v43 = vsub.f32 %v2840_v49, %v817_v62 }
 0x422   :  { %v2898_v46 = vpop.eup %2454  ;;  %2468 = vpow2.f32 %v870_v60 }
 0x423   :  { %v2900_v24 = vpop.eup %2456  ;;  %v866_v0 = vmul.f32 1.442695, %v837_v43  ;;  %v902_v29 = vsel %vm775_vm5, %v2898_v46, 0.0 }
 0x424   :  { %903 = vadd.xlane.f32.xlu1 %v902_v29  ;;  %v887_v1 = vsel %vm775_vm5, %v2900_v24, 0.0  ;;  %v1008_v27 = vpop.permute.xlu0 %1007  ;;  %v1102_v31 = vpop.permute.xlu1 %1101 }
 0x425   :  { %2470 = vpow2.f32 %v866_v0  ;;  %888 = vadd.xlane.f32.xlu0 %v887_v1  ;;  %2239 = vmatpush3.bf16.msra.mxu0 %v1008_v27 }
 0x426   :  { %v2906_v19 = vpop.eup %2458  ;;  %2250 = vmatprep.subr.bf16.mxu0 %v2545_v6 }
 0x427   :  { %v2909_v49 = vpop.eup %2460  ;;  %v896_v4 = vsel %vm775_vm5, %v2906_v19, 0.0 }
 0x428   :  { %897 = vadd.xlane.f32.xlu1 %v896_v4  ;;  %v905_v7 = vsel %vm775_vm5, %v2909_v49, 0.0  ;;  %v1196_v33 = vpop.permute.xlu1 %1195  ;;  %v2939_v34 = vpop.permute.xlu0 %1148 }
 0x429   :  { %906 = vadd.xlane.f32.xlu0 %v905_v7 }
 0x42a   :  { %v2915_v9 = vpop.eup %2462 }
 0x42b   :  { %v2917_v10 = vpop.eup %2464  ;;  %v914_v11 = vsel %vm775_vm5, %v2915_v9, 0.0 }
 0x42c   :  { %915 = vadd.xlane.f32.xlu1 %v914_v11  ;;  %v899_v12 = vsel %vm775_vm5, %v2917_v10, 0.0 }
 0x42d   :  { %900 = vadd.xlane.f32.xlu0 %v899_v12 }
 0x42e   :  { %v2923_v15 = vpop.eup %2466 }
 0x42f   :  { %v2925_v17 = vpop.eup %2468  ;;  %v908_v20 = vsel %vm775_vm5, %v2923_v15, 0.0 }
 0x430   :  { %909 = vadd.xlane.f32.xlu1 %v908_v20  ;;  %v917_v22 = vsel %vm775_vm5, %v2925_v17, 0.0 }
 0x431   :  { %918 = vadd.xlane.f32.xlu0 %v917_v22 }
 0x432   :  { %v2931_v26 = vpop.eup %2470 }
 0x433   :  { %v911_v28 = vsel %vm775_vm5, %v2931_v26, 0.0 }
 0x435   :  { %912 = vadd.xlane.f32.xlu0 %v911_v28 }
 0x441   :  { %1289 = vrot.lane.b32.xlu1 %v2703_v37, %s2549_s23 }
 0x44b   :  { %1242 = vrot.lane.b32.xlu0 %v2695_v32, %s2549_s23 }
 0x459   :  { %v880_v41 = vpop.xlane.xlu1 %879  ;;  %v883_v36 = vpop.xlane.xlu0 %882 }
 0x45a   :  { %2472 = vrcp.f32 %v880_v41 }
 0x45b   :  { %2474 = vrcp.f32 %v883_v36 }
 0x45d   :  { %v874_v38 = vpop.xlane.xlu1 %873  ;;  %v877_v39 = vpop.xlane.xlu0 %876 }
 0x45e   :  { %2476 = vrcp.f32 %v874_v38 }
 0x45f   :  { %2478 = vrcp.f32 %v877_v39 }
 0x467   :  { %v2473_v44 = vpop.eup %2472 }
 0x468   :  { %v2475_v54 = vpop.eup %2474  ;;  %v938_v37 = vmul.f32 %v2473_v44, %v2858_v8 }
 0x469   :  { %v939_v40 = vmul.f32 %v2475_v54, %v2860_v21 }
 0x46b   :  { %v2477_v42 = vpop.eup %2476  ;;  %v953_v32 = vpack.c.bf16 %v939_v40, %v938_v37 }
 0x46c   :  { %v2479_v45 = vpop.eup %2478  ;;  %v936_v2 = vmul.f32 %v2477_v42, %v2862_v13 }
 0x46d   :  { %2241 = vmatmul.mubr.msk.bf16.vlgmr.msra.gmra.mxu0 %vm775_vm5, %v953_v32  ;;  %v937_v63 = vmul.f32 %v2479_v45, %v2868_v25 }
 0x46e   :  { %2251 = vmatpush3.bf16.msra.mxu0 %v1102_v31  ;;  %2252 = vmatprep.mubr.msk.bf16.mxu0 %vm2546_vm3, %v2545_v6 }
 0x46f   :  { %v952_v48 = vpack.c.bf16 %v937_v63, %v936_v2  ;;  %2262 = vmatprep.subr.bf16.mxu0 %v2545_v6 }
 0x471   :  { %2235 = vmatmul.mubr.msk.bf16.vlgmr.msra.gmra.mxu1 %vm775_vm5, %v952_v48 }
 0x472   :  { %2245 = vmatpush3.bf16.msra.mxu1 %v1055_v30  ;;  %2246 = vmatprep.mubr.msk.bf16.mxu1 %vm2546_vm3, %v2545_v6 }
 0x473   :  { %2256 = vmatprep.subr.bf16.mxu1 %v2545_v6 }
 0x4a5   :  { %v892_v8 = vpop.xlane.xlu1 %891 }
 0x4a6   :  { %2480 = vrcp.f32 %v892_v8 }
 0x4a9   :  { %v886_v21 = vpop.xlane.xlu1 %885 }
 0x4aa   :  { %v895_v13 = vpop.xlane.xlu0 %894 }
 0x4ab   :  { %2482 = vrcp.f32 %v895_v13 }
 0x4ac   :  { %2484 = vrcp.f32 %v886_v21 }
 0x4ad   :  { %v904_v25 = vpop.xlane.xlu1 %903 }
 0x4ae   :  { %v889_v55 = vpop.xlane.xlu0 %888 }
 0x4af   :  { %2486 = vrcp.f32 %v889_v55 }
 0x4b0   :  { %2488 = vrcp.f32 %v904_v25 }
 0x4b1   :  { %v898_v14 = vpop.xlane.xlu1 %897 }
 0x4b2   :  { %v907_v3 = vpop.xlane.xlu0 %906 }
 0x4b3   :  { %2490 = vrcp.f32 %v907_v3  ;;  %v2481_v5 = vpop.eup %2480 }
 0x4b4   :  { %2492 = vrcp.f32 %v898_v14  ;;  %v942_v60 = vmul.f32 %v2481_v5, %v2883_v47 }
 0x4b5   :  { %v916_v18 = vpop.xlane.xlu1 %915 }
 0x4b6   :  { %v901_v56 = vpop.xlane.xlu0 %900 }
 0x4b7   :  { %2494 = vrcp.f32 %v901_v56 }
 0x4b8   :  { %v2483_v35 = vpop.eup %2482  ;;  %2496 = vrcp.f32 %v916_v18  ;;  %v2416_v18 = vld [vmem:[%s3136_s5 + $0x8] sm:$0xff]  }
 0x4b9   :  { %v943_v16 = vmul.f32 %v2483_v35, %v2891_v23  ;;  %v2485_v61 = vpop.eup %2484  ;;  %v910_v62 = vpop.xlane.xlu1 %909 }
 0x4ba   :  { %v919_v43 = vpop.xlane.xlu0 %918  ;;  %v940_v1 = vmul.f32 %v2485_v61, %v2889_v58  ;;  %v2417_v61 = vld [vmem:[%s3136_s5] sm:$0xff]  }
 0x4bb   :  { %2498 = vrcp.f32 %v919_v43  ;;  %v955_v0 = vpack.c.bf16 %v943_v16, %v942_v60 }
 0x4bc   :  { %v2487_v29 = vpop.eup %2486  ;;  %2500 = vrcp.f32 %v910_v62 }
 0x4bd   :  { %2253 = vmatmul.mubr.msk.bf16.vlgmr.msra.gmra.mxu0 %vm775_vm5, %v955_v0  ;;  %v941_v27 = vmul.f32 %v2487_v29, %v2900_v24  ;;  %v2489_v4 = vpop.eup %2488  ;;  %v1290_v22 = vpop.permute.xlu1 %1289 }
 0x4be   :  { %2263 = vmatpush3.bf16.msra.mxu0 %v1196_v33  ;;  %v913_v7 = vpop.xlane.xlu0 %912  ;;  %2264 = vmatprep.mubr.msk.bf16.mxu0 %vm2546_vm3, %v2545_v6  ;;  %v946_v11 = vmul.f32 %v2489_v4, %v2898_v46 }
 0x4bf   :  { %2502 = vrcp.f32 %v913_v7  ;;  %v954_v47 = vpack.c.bf16 %v941_v27, %v940_v1  ;;  %2274 = vmatprep.subr.bf16.mxu0 %v2545_v6 }
 0x4c0   :  { %v2491_v23 = vpop.eup %2490 }
 0x4c1   :  { %2247 = vmatmul.mubr.msk.bf16.vlgmr.msra.gmra.mxu1 %vm775_vm5, %v954_v47  ;;  %v947_v12 = vmul.f32 %v2491_v23, %v2909_v49  ;;  %v2493_v58 = vpop.eup %2492 }
 0x4c2   :  { %2257 = vmatpush3.bf16.msra.mxu1 %v2939_v34  ;;  %2258 = vmatprep.mubr.msk.bf16.mxu1 %vm2546_vm3, %v2545_v6  ;;  %v944_v28 = vmul.f32 %v2493_v58, %v2906_v19  ;;  %v1243_v33 = vpop.permute.xlu0 %1242 }
 0x4c3   :  { %v957_v24 = vpack.c.bf16 %v947_v12, %v946_v11  ;;  %2268 = vmatprep.subr.bf16.mxu1 %v2545_v6 }
 0x4c4   :  { %v2495_v20 = vpop.eup %2494 }
 0x4c5   :  { %2265 = vmatmul.mubr.msk.bf16.vlgmr.msra.gmra.mxu0 %vm775_vm5, %v957_v24  ;;  %v945_v30 = vmul.f32 %v2495_v20, %v2917_v10  ;;  %v2497_v46 = vpop.eup %2496 }
 0x4c6   :  { %2275 = vmatpush3.bf16.msra.mxu0 %v1290_v22  ;;  %2276 = vmatprep.mubr.msk.bf16.mxu0 %vm2546_vm3, %v2545_v6  ;;  %v950_v34 = vmul.f32 %v2497_v46, %v2915_v9 }
 0x4c7   :  { %v956_v49 = vpack.c.bf16 %v945_v30, %v944_v28 }
 0x4c8   :  { %v2499_v31 = vpop.eup %2498 }
 0x4c9   :  { %2259 = vmatmul.mubr.msk.bf16.vlgmr.msra.gmra.mxu1 %vm775_vm5, %v956_v49  ;;  %v951_v41 = vmul.f32 %v2499_v31, %v2925_v17  ;;  %v2501_v36 = vpop.eup %2500 }
 0x4ca   :  { %2269 = vmatpush3.bf16.msra.mxu1 %v1243_v33  ;;  %2270 = vmatprep.mubr.msk.bf16.mxu1 %vm2546_vm3, %v2545_v6  ;;  %v948_v38 = vmul.f32 %v2501_v36, %v2923_v15 }
 0x4cb   :  { %v959_v19 = vpack.c.bf16 %v951_v41, %v950_v34  ;;  %2280 = vmatprep.subr.bf16.mxu1 %v2416_v18 }
 0x4cc   :  { %v2503_v10 = vpop.eup %2502 }
 0x4cd   :  { %2277 = vmatmul.mubr.msk.bf16.vlgmr.msra.gmra.mxu0 %vm775_vm5, %v959_v19  ;;  %v949_v39 = vmul.f32 %v2503_v10, %v2931_v26 }
 0x4cf   :  { %v958_v44 = vpack.c.bf16 %v949_v39, %v948_v38 }
 0x4d1   :  { %2271 = vmatmul.mubr.msk.bf16.vlgmr.msra.gmra.mxu1 %vm775_vm5, %v958_v44 }
 0x4d2   :  { %2281 = vmatpush3.bf16.msra.mxu1 %v2416_v18 }
 0x4d3   :  { %2282 = vmatprep.subr.bf16.mxu1 %v2417_v61 }
 0x4d6   :  { %2283 = vmatpush3.bf16.msra.mxu1 %v2417_v61 }
 0x52d   :  { %v2982_v54 = vpop.f32.mrf.mxu0 }
 0x52f   :  { %v2242_v9 = vpop.f32.mrf.mxu0 }
 0x531   :  { %v2984_v17 = vpop.f32.mrf.mxu1  ;;  %v2986_v37 = vpop.f32.mrf.mxu0 }
 0x533   :  { %v2236_v40 = vpop.f32.mrf.mxu1  ;;  %v2243_v42 = vpop.f32.mrf.mxu0 }
 0x535   :  { %v2988_v32 = vpop.f32.mrf.mxu1 }
 0x537   :  { %v2237_v45 = vpop.f32.mrf.mxu1 }
 0x57d   :  { %v1141_v2 = vpop.f32.mrf.mxu0 }
 0x57f   :  { %v2254_v63 = vpop.f32.mrf.mxu0 }
 0x581   :  { %v1094_v15 = vpop.f32.mrf.mxu1  ;;  %v1144_v48 = vpop.f32.mrf.mxu0 }
 0x582   :  { %v2379_v26 = vpack.i.bf16 %v1144_v48, %v1141_v2 }
 0x583   :  { %v2248_v8 = vpop.f32.mrf.mxu1  ;;  %v2255_v21 = vpop.f32.mrf.mxu0 }
 0x584   :  { %2380 = vrot.lane.b32.xlu1 %v2379_v26, %s2551_s1 }
 0x585   :  { %v1097_v13 = vpop.f32.mrf.mxu1  ;;  %v1235_v25 = vpop.f32.mrf.mxu0 }
 0x586   :  { %v2384_v55 = vpack.i.bf16 %v1097_v13, %v1094_v15 }
 0x587   :  { %v2249_v14 = vpop.f32.mrf.mxu1  ;;  %v2266_v3 = vpop.f32.mrf.mxu0 }
 0x588   :  { %2385 = vrot.lane.b32.xlu0 %v2384_v55, %s2551_s1 }
 0x589   :  { %v1188_v5 = vpop.f32.mrf.mxu1  ;;  %v1238_v56 = vpop.f32.mrf.mxu0 }
 0x58a   :  { %v2389_v35 = vpack.i.bf16 %v1238_v56, %v1235_v25  ;;  %v3014_v25 = vld [vmem:[%s3142_s11] sm:$0xff] }
 0x58b   :  { %v2260_v60 = vpop.f32.mrf.mxu1  ;;  %v2267_v16 = vpop.f32.mrf.mxu0 }
 0x58c   :  { %2390 = vrot.lane.b32.xlu1 %v2389_v35, %s2552_s28 }
 0x58d   :  { %v1191_v62 = vpop.f32.mrf.mxu1  ;;  %v1329_v43 = vpop.f32.mrf.mxu0 }
 0x58e   :  { %v2394_v0 = vpack.i.bf16 %v1191_v62, %v1188_v5 }
 0x58f   :  { %v2261_v29 = vpop.f32.mrf.mxu1  ;;  %v2278_v1 = vpop.f32.mrf.mxu0 }
 0x590   :  { %2395 = vrot.lane.b32.xlu0 %v2394_v0, %s2552_s28 }
 0x591   :  { %v1282_v27 = vpop.f32.mrf.mxu1  ;;  %v1332_v4 = vpop.f32.mrf.mxu0 }
 0x592   :  { %v2404_v7 = vpack.i.bf16 %v1332_v4, %v1329_v43 }
 0x593   :  { %v2272_v47 = vpop.f32.mrf.mxu1  ;;  %v2279_v23 = vpop.f32.mrf.mxu0 }
 0x594   :  { %2405 = vrot.lane.b32.xlu1 %v2404_v7, %s2553_s13 }
 0x595   :  { %v1285_v11 = vpop.f32.mrf.mxu1 }
 0x596   :  { %v2399_v12 = vpack.i.bf16 %v1285_v11, %v1282_v27 }
 0x597   :  { %v2273_v58 = vpop.f32.mrf.mxu1 }
 0x598   :  { %2400 = vrot.lane.b32.xlu0 %v2399_v12, %s2553_s13 }
 0x5f6   :  { %v2381_v24 = vpop.permute.xlu1 %2380 }
 0x5f7   :  { %v2383_v30 = vunpack.i.h.bf16 %v2381_v24  ;;  %v2382_v46 = vunpack.i.l.bf16 %v2381_v24 }
 0x5f9   :  { %v1387_v39 = vsel %vm312_vm4, %v2986_v37, %v2383_v30  ;;  %v1386_v44 = vsel %vm312_vm4, %v2982_v54, %v2382_v46 }
 0x5fa   :  { %v2386_v20 = vpop.permute.xlu0 %2385 }
 0x5fb   :  { %v2388_v49 = vunpack.i.h.bf16 %v2386_v20  ;;  %v2387_v31 = vunpack.i.l.bf16 %v2386_v20 }
 0x5fd   :  { %v1385_v9 = vsel %vm312_vm4, %v2988_v32, %v2388_v49  ;;  %v1384_v40 = vsel %vm312_vm4, %v2984_v17, %v2387_v31  ;;  %v1405_v17 = vsub.s32 1, %v2661_v57 }
 0x5fe   :  { %v2391_v22 = vpop.permute.xlu1 %2390 }
 0x5ff   :  { %v2393_v34 = vunpack.i.h.bf16 %v2391_v22  ;;  %v2392_v41 = vunpack.i.l.bf16 %v2391_v22  ;;  %v1406_v55 = vrot.slane %v3014_v25, %v1405_v17 }
 0x601   :  { %v1391_v45 = vsel %vm775_vm5, %v1387_v39, %v2393_v34  ;;  %v1390_v2 = vsel %vm775_vm5, %v1386_v44, %v2392_v41  ;;  %v2418_v41 = vld [vmem:[%s3137_s6 + $0x8] sm:$0xff]  }
 0x602   :  { %v2396_v28 = vpop.permute.xlu0 %2395  ;;  %2288 = vmatprep.subr.bf16.mxu0 %v2418_v41 }
 0x603   :  { %v2398_v36 = vunpack.i.h.bf16 %v2396_v28  ;;  %v2397_v19 = vunpack.i.l.bf16 %v2396_v28  ;;  %2289 = vmatpush3.bf16.msra.mxu0 %v2418_v41 }
 0x605   :  { %v1388_v48 = vsel %vm775_vm5, %v1384_v40, %v2397_v19  ;;  %v1389_v37 = vsel %vm775_vm5, %v1385_v9, %v2398_v36  ;;  %v2419_v36 = vld [vmem:[%s3137_s6] sm:$0xff]   ;;  %v2420_v19 = vld [vmem:[%s3138_s7 + $0x18] sm:$0xff]  }
 0x606   :  { %v2406_v33 = vpop.permute.xlu1 %2405  ;;  %2290 = vmatprep.subr.bf16.mxu0 %v2419_v36  ;;  %2296 = vmatprep.subr.bf16.mxu1 %v2420_v19 }
 0x607   :  { %v2408_v10 = vunpack.i.h.bf16 %v2406_v33  ;;  %v2407_v38 = vunpack.i.l.bf16 %v2406_v33  ;;  %2291 = vmatpush3.bf16.msra.mxu0 %v2419_v36 }
 0x608   :  { %2308 = vmatprep.subr.bf16.mxu0 %v2545_v6 }
 0x609   :  { %v1396_v26 = vsel %vm1392_vm6, %v1391_v45, %v2408_v10  ;;  %v1395_v8 = vsel %vm1392_vm6, %v1390_v2, %v2407_v38 }
 0x60a   :  { %v2401_v42 = vpop.permute.xlu0 %2400  ;;  %v1398_v32 = vpack.c.bf16 %v1396_v26, %v1395_v8 }
 0x60b   :  { %v2403_v63 = vunpack.i.h.bf16 %v2401_v42  ;;  %v2402_v15 = vunpack.i.l.bf16 %v2401_v42 }
 0x60d   :  { %v1393_v54 = vsel %vm1392_vm6, %v1388_v48, %v2402_v15  ;;  %v1394_v21 = vsel %vm1392_vm6, %v1389_v37, %v2403_v63  ;;  %v1533_v37 = vsub.s32 2, %v2661_v57 }
 0x60e   :  { %v1397_v13 = vpack.c.bf16 %v1394_v21, %v1393_v54  ;;  %v1541_v21 = vsub.s32 3, %v2661_v57 }
 0x60f   :  { %v1534_v54 = vrot.slane %v3014_v25, %v1533_v37 }
 0x610   :  { %2284 = vmatprep.mubr.msk.bf16.mxu1 %vm203_vm2, %v1397_v13 }
 0x611   :  { %2285 = vmatmul.mubr.msk.bf16.vlgmr.msra.gmra.mxu1 %vm203_vm2, %v1398_v32 }
 0x612   :  { %2297 = vmatpush3.bf16.msra.mxu1 %v2420_v19 }
 0x6d1   :  { %v2286_v14 = vpop.f32.mrf.mxu1 }
 0x6d2   :  { %v1468_v18 = vadd.f32 %v2286_v14, %v1406_v55 }
 0x6d3   :  { %v1459_v3 = vpop.f32.mrf.mxu1 }
 0x6d4   :  { %v1460_v5 = vadd.f32 %v1459_v3, %v1406_v55  ;;  %v1476_v43 = vadd.f32 %v1468_v18, %v2653_v53  ;;  %v1542_v18 = vrot.slane %v3014_v25, %v1541_v21 }
 0x6d5   :  { %v2287_v56 = vpop.f32.mrf.mxu1 }
 0x6d6   :  { %v1474_v35 = vadd.f32 %v1460_v5, %v2649_v51  ;;  %v1471_v16 = vadd.f32 %v2287_v56, %v1406_v55  ;;  %v1484_v1 = vsel %vm203_vm2, %v1476_v43, 0.0 }
 0x6d7   :  { %v1462_v60 = vpop.f32.mrf.mxu1 }
 0x6d8   :  { %v1463_v61 = vadd.f32 %v1462_v60, %v1406_v55  ;;  %v1478_v62 = vsel %vm203_vm2, %v1474_v35, 0.0  ;;  %v1477_v27 = vadd.f32 %v1471_v16, %v2647_v50 }
 0x6d9   :  { %1479 = vadd.xlane.f32.xlu0 %v1478_v62 }
 0x6da   :  { %v1475_v0 = vadd.f32 %v1463_v61, %v2651_v52  ;;  %v1487_v51 = vsel %vm203_vm2, %v1477_v27, 0.0 }
 0x6dc   :  { %v1481_v29 = vsel %vm203_vm2, %v1475_v0, 0.0 }
 0x6dd   :  { %1482 = vadd.xlane.f32.xlu1 %v1481_v29  ;;  %1485 = vadd.xlane.f32.xlu0 %v1484_v1 }
 0x6e1   :  { %1488 = vadd.xlane.f32.xlu0 %v1487_v51  ;;  %v2422_v51 = vld [vmem:[%s3138_s7 + $0x8] sm:$0xff]  }
 0x762   :  { %v1480_v4 = vpop.xlane.xlu0 %1479 }
 0x763   :  { %v1491_v7 = vmul.f32 0.03125, %v1480_v4  ;;  %v2423_v4 = vld [vmem:[%s3138_s7] sm:$0xff]  }
 0x765   :  { %v1495_v47 = vsub.f32 %v1474_v35, %v1491_v7  ;;  %v1555_v7 = vsub.s32 4, %v2661_v57 }
 0x766   :  { %v1483_v23 = vpop.xlane.xlu1 %1482  ;;  %v1486_v11 = vpop.xlane.xlu0 %1485 }
 0x767   :  { %v1492_v53 = vmul.f32 0.03125, %v1483_v23  ;;  %v1493_v12 = vmul.f32 0.03125, %v1486_v11  ;;  %v1499_v58 = vmul.f32 %v1495_v47, %v1495_v47  ;;  %v1556_v23 = vrot.slane %v3014_v25, %v1555_v7 }
 0x769   :  { %v1496_v52 = vsub.f32 %v1475_v0, %v1492_v53  ;;  %v1497_v24 = vsub.f32 %v1476_v43, %v1493_v12  ;;  %v1503_v20 = vsel %vm203_vm2, %v1499_v58, 0.0 }
 0x76a   :  { %1504 = vadd.xlane.f32.xlu1 %v1503_v20  ;;  %v1489_v22 = vpop.xlane.xlu0 %1488 }
 0x76b   :  { %v1494_v50 = vmul.f32 0.03125, %v1489_v22  ;;  %v1500_v28 = vmul.f32 %v1496_v52, %v1496_v52  ;;  %v1501_v30 = vmul.f32 %v1497_v24, %v1497_v24 }
 0x76d   :  { %v1498_v46 = vsub.f32 %v1477_v27, %v1494_v50  ;;  %v1506_v49 = vsel %vm203_vm2, %v1500_v28, 0.0  ;;  %v1509_v31 = vsel %vm203_vm2, %v1501_v30, 0.0  ;;  %v2421_v27 = vld [vmem:[%s3138_s7 + $0x10] sm:$0xff]  }
 0x76e   :  { %1507 = vadd.xlane.f32.xlu0 %v1506_v49  ;;  %1510 = vadd.xlane.f32.xlu1 %v1509_v31  ;;  %v1640_v31 = vsub.s32 5, %v2661_v57 }
 0x76f   :  { %v1502_v33 = vmul.f32 %v1498_v46, %v1498_v46  ;;  %2298 = vmatprep.subr.bf16.mxu1 %v2421_v27 }
 0x770   :  { %2299 = vmatpush3.bf16.msra.mxu1 %v2421_v27  ;;  %v2425_v27 = vld [vmem:[%s3139_s8] sm:$0xff]  }
 0x771   :  { %v1512_v34 = vsel %vm203_vm2, %v1502_v33, 0.0  ;;  %2300 = vmatprep.subr.bf16.mxu1 %v2422_v51  ;;  %v1641_v33 = vrot.slane %v3014_v25, %v1640_v31 }
 0x772   :  { %1513 = vadd.xlane.f32.xlu0 %v1512_v34 }
 0x774   :  { %2301 = vmatpush3.bf16.msra.mxu1 %v2422_v51 }
 0x775   :  { %2302 = vmatprep.subr.bf16.mxu1 %v2423_v4 }
 0x778   :  { %2303 = vmatpush3.bf16.msra.mxu1 %v2423_v4 }
 0x779   :  { %2328 = vmatprep.subr.bf16.mxu1 %v2545_v6 }
 0x7f3   :  { %v1505_v10 = vpop.xlane.xlu1 %1504 }
 0x7f4   :  { %v1515_v38 = vmul.f32 0.03125, %v1505_v10 }
 0x7f6   :  { %v1519_v39 = vadd.f32 1e-05, %v1515_v38 }
 0x7f7   :  { %v1511_v44 = vpop.xlane.xlu1 %1510  ;;  %v1508_v9 = vpop.xlane.xlu0 %1507 }
 0x7f8   :  { %2504 = vrsqrt.f32 %v1519_v39  ;;  %v1517_v40 = vmul.f32 0.03125, %v1511_v44  ;;  %v1516_v42 = vmul.f32 0.03125, %v1508_v9 }
 0x7fa   :  { %v1521_v45 = vadd.f32 1e-05, %v1517_v40  ;;  %v1520_v2 = vadd.f32 1e-05, %v1516_v42 }
 0x7fb   :  { %v1514_v63 = vpop.xlane.xlu0 %1513 }
 0x7fc   :  { %2506 = vrsqrt.f32 %v1521_v45  ;;  %v1518_v15 = vmul.f32 0.03125, %v1514_v63 }
 0x7fd   :  { %2508 = vrsqrt.f32 %v1520_v2 }
 0x7fe   :  { %v1522_v48 = vadd.f32 1e-05, %v1518_v15 }
 0x800   :  { %2510 = vrsqrt.f32 %v1522_v48 }
 0x805   :  { %v2505_v26 = vpop.eup %2504 }
 0x806   :  { %v1527_v8 = vmul.f32 %v2505_v26, %v1495_v47 }
 0x808   :  { %v1535_v3 = vmul.f32 %v1534_v54, %v1527_v8 }
 0x809   :  { %v2507_v13 = vpop.eup %2506 }
 0x80a   :  { %v2509_v32 = vpop.eup %2508  ;;  %v1529_v55 = vmul.f32 %v2507_v13, %v1497_v24  ;;  %v1543_v16 = vadd.f32 %v1542_v18, %v1535_v3 }
 0x80b   :  { %v1528_v14 = vmul.f32 %v2509_v32, %v1496_v52 }
 0x80c   :  { %v1537_v60 = vmul.f32 %v1534_v54, %v1529_v55 }
 0x80d   :  { %v2511_v5 = vpop.eup %2510  ;;  %v1536_v56 = vmul.f32 %v1534_v54, %v1528_v14 }
 0x80e   :  { %v1530_v35 = vmul.f32 %v2511_v5, %v1498_v46  ;;  %v1545_v0 = vadd.f32 %v1542_v18, %v1537_v60 }
 0x80f   :  { %v1544_v61 = vadd.f32 %v1542_v18, %v1536_v56 }
 0x810   :  { %v1538_v62 = vmul.f32 %v1534_v54, %v1530_v35 }
 0x811   :  { %v1547_v43 = vpack.c.bf16 %v1544_v61, %v1543_v16 }
 0x812   :  { %v1546_v29 = vadd.f32 %v1542_v18, %v1538_v62 }
 0x813   :  { %2292 = vmatprep.mubr.msk.bf16.mxu0 %vm203_vm2, %v1547_v43 }
 0x814   :  { %v1548_v1 = vpack.c.bf16 %v1546_v29, %v1545_v0 }
 0x816   :  { %2293 = vmatmul.mubr.msk.bf16.vlgmr.msra.gmra.mxu0 %vm203_vm2, %v1548_v1  ;;  %v2424_v1 = vld [vmem:[%s3139_s8 + $0x8] sm:$0xff]  }
 0x817   :  { %2312 = vmatprep.mubr.msk.bf16.mxu0 %vm2546_vm3, %v2545_v6  ;;  %2309 = vmatpush3.bf16.msra.mxu0 %v2424_v1  ;;  %v2426_v1 = vld [vmem:[%s3140_s9 + $0x18] sm:$0xff]  }
 0x818   :  { %2310 = vmatprep.subr.bf16.mxu0 %v2545_v6 }
 0x81b   :  { %2311 = vmatpush3.bf16.msra.mxu0 %v2425_v27 }
 0x81c   :  { %2316 = vmatprep.subr.bf16.mxu0 %v2545_v6 }
 0x8d6   :  { %v2294_v47 = vpop.f32.mrf.mxu0 }
 0x8d7   :  { %v1618_v52 = vadd.f32 %v2294_v47, %v1556_v23 }
 0x8d8   :  { %v1609_v11 = vpop.f32.mrf.mxu0 }
 0x8d9   :  { %v1610_v12 = vadd.f32 %v1609_v11, %v1556_v23  ;;  %v1626_v30 = vmax.f32 %v1618_v52, 0.0 }
 0x8da   :  { %v2295_v53 = vpop.f32.mrf.mxu0 }
 0x8db   :  { %v1621_v58 = vadd.f32 %v2295_v53, %v1556_v23  ;;  %v1624_v50 = vmax.f32 %v1610_v12, 0.0 }
 0x8dc   :  { %v1612_v24 = vpop.f32.mrf.mxu0 }
 0x8dd   :  { %v1613_v20 = vadd.f32 %v1612_v24, %v1556_v23  ;;  %v1627_v22 = vmax.f32 %v1621_v58, 0.0 }
 0x8df   :  { %v1625_v28 = vmax.f32 %v1613_v20, 0.0  ;;  %v1629_v49 = vpack.c.bf16 %v1627_v22, %v1626_v30  ;;  %v1780_v22 = vsub.s32 6, %v2661_v57 }
 0x8e1   :  { %v1628_v46 = vpack.c.bf16 %v1625_v28, %v1624_v50  ;;  %v1781_v50 = vrot.slane %v3014_v25, %v1780_v22  ;;  %v1788_v28 = vsub.s32 7, %v2661_v57  ;;  %v2430_v22 = vld [vmem:[%s3141_s10 + $0x8] sm:$0xff]  }
 0x8e3   :  { %2304 = vmatprep.mubr.msk.bf16.mxu1 %vm1666_vm7, %v1628_v46 }
 0x8e4   :  { %2305 = vmatmul.mubr.msk.bf16.vlgmr.msra.gmra.mxu1 %vm1666_vm7, %v1629_v49  ;;  %v1789_v49 = vrot.slane %v3014_v25, %v1788_v28 }
 0x8e5   :  { %2332 = vmatprep.mubr.msk.bf16.mxu1 %vm2546_vm3, %v2545_v6  ;;  %2329 = vmatpush3.bf16.msra.mxu1 %v2430_v22 }
 0x8e6   :  { %2330 = vmatprep.subr.bf16.mxu1 %v2545_v6 }
 0x9a4   :  { %v2306_v34 = vpop.f32.mrf.mxu1 }
 0x9a5   :  { %v1716_v36 = vadd.f32 %v2306_v34, %v1641_v33 }
 0x9a6   :  { %v1707_v41 = vpop.f32.mrf.mxu1 }
 0x9a7   :  { %v1708_v19 = vadd.f32 %v1707_v41, %v1641_v33  ;;  %v1724_v42 = vadd.f32 %v1716_v36, %v1545_v0 }
 0x9a8   :  { %v2307_v10 = vpop.f32.mrf.mxu1 }
 0x9a9   :  { %v1722_v38 = vadd.f32 %v1708_v19, %v1543_v16  ;;  %v1719_v44 = vadd.f32 %v2307_v10, %v1641_v33  ;;  %v1732_v63 = vsel %vm203_vm2, %v1724_v42, 0.0 }
 0x9aa   :  { %v1710_v39 = vpop.f32.mrf.mxu1 }
 0x9ab   :  { %v1711_v9 = vadd.f32 %v1710_v39, %v1641_v33  ;;  %v1726_v40 = vsel %vm203_vm2, %v1722_v38, 0.0  ;;  %v1725_v15 = vadd.f32 %v1719_v44, %v1546_v29 }
 0x9ac   :  { %1727 = vadd.xlane.f32.xlu1 %v1726_v40 }
 0x9ad   :  { %v1723_v45 = vadd.f32 %v1711_v9, %v1544_v61  ;;  %v1735_v48 = vsel %vm203_vm2, %v1725_v15, 0.0 }
 0x9af   :  { %v1729_v2 = vsel %vm203_vm2, %v1723_v45, 0.0 }
 0x9b0   :  { %1730 = vadd.xlane.f32.xlu0 %v1729_v2  ;;  %1733 = vadd.xlane.f32.xlu1 %v1732_v63 }
 0x9b4   :  { %1736 = vadd.xlane.f32.xlu0 %v1735_v48 }
 0xa35   :  { %v1728_v26 = vpop.xlane.xlu1 %1727 }
 0xa36   :  { %v1738_v8 = vmul.f32 0.03125, %v1728_v26 }
 0xa38   :  { %v1742_v54 = vsub.f32 %v1722_v38, %v1738_v8 }
 0xa39   :  { %v1731_v21 = vpop.xlane.xlu0 %1730  ;;  %v1734_v13 = vpop.xlane.xlu1 %1733 }
 0xa3a   :  { %v1739_v32 = vmul.f32 0.03125, %v1731_v21  ;;  %v1740_v55 = vmul.f32 0.03125, %v1734_v13  ;;  %v1746_v14 = vmul.f32 %v1742_v54, %v1742_v54 }
 0xa3c   :  { %v1743_v3 = vsub.f32 %v1723_v45, %v1739_v32  ;;  %v1744_v18 = vsub.f32 %v1724_v42, %v1740_v55  ;;  %v1750_v5 = vsel %vm203_vm2, %v1746_v14, 0.0 }
 0xa3d   :  { %v1737_v56 = vpop.xlane.xlu0 %1736  ;;  %1751 = vadd.xlane.f32.xlu1 %v1750_v5 }
 0xa3e   :  { %v1741_v35 = vmul.f32 0.03125, %v1737_v56  ;;  %v1747_v60 = vmul.f32 %v1743_v3, %v1743_v3  ;;  %v1748_v16 = vmul.f32 %v1744_v18, %v1744_v18 }
 0xa40   :  { %v1745_v61 = vsub.f32 %v1725_v15, %v1741_v35  ;;  %v1753_v62 = vsel %vm203_vm2, %v1747_v60, 0.0  ;;  %v1756_v43 = vsel %vm203_vm2, %v1748_v16, 0.0 }
 0xa41   :  { %1754 = vadd.xlane.f32.xlu0 %v1753_v62  ;;  %1757 = vadd.xlane.f32.xlu1 %v1756_v43 }
 0xa42   :  { %v1749_v0 = vmul.f32 %v1745_v61, %v1745_v61 }
 0xa44   :  { %v1759_v29 = vsel %vm203_vm2, %v1749_v0, 0.0 }
 0xa45   :  { %1760 = vadd.xlane.f32.xlu0 %v1759_v29 }
 0xac6   :  { %v1752_v51 = vpop.xlane.xlu1 %1751 }
 0xac7   :  { %v1762_v4 = vmul.f32 0.03125, %v1752_v51  ;;  %v2427_v51 = vld [vmem:[%s3140_s9 + $0x10] sm:$0xff]  }
 0xac9   :  { %v1766_v7 = vadd.f32 1e-05, %v1762_v4  ;;  %v2428_v4 = vld [vmem:[%s3140_s9 + $0x8] sm:$0xff]  }
 0xaca   :  { %v1755_v47 = vpop.xlane.xlu0 %1754  ;;  %v1758_v23 = vpop.xlane.xlu1 %1757 }
 0xacb   :  { %2512 = vrsqrt.f32 %v1766_v7  ;;  %v1763_v11 = vmul.f32 0.03125, %v1755_v47  ;;  %v1764_v53 = vmul.f32 0.03125, %v1758_v23  ;;  %v2429_v7 = vld [vmem:[%s3140_s9] sm:$0xff]   ;;  %v44_v47 = vld [vmem:[%s3142_s11 + $0x8] sm:$0xff] }
 0xacc   :  { %v1824_v23 = vrot.slane %v44_v47, %v2664_v59  ;;  %v2431_v59 = vld [vmem:[%s3141_s10] sm:$0xff]   ;;  %s2521_s10 = scalar_lea.vmem %s2041_s2, 32 }
 0xacd   :  { %v1767_v12 = vadd.f32 1e-05, %v1763_v11  ;;  %v1768_v58 = vadd.f32 1e-05, %v1764_v53  ;;  %2331 = vmatpush3.bf16.msra.mxu1 %v2431_v59  ;;  %p2522_p0 = scmp.ne.s32.totalorder %s2041_s2, %s2521_s10  ;;  %p2527_p2 = scmp.lt.s32.totalorder %s2521_s10, %s2521_s10 }
 0xace   :  { %v1761_v52 = vpop.xlane.xlu0 %1760 }
 0xacf   :  { %2514 = vrsqrt.f32 %v1767_v12  ;;  %v1765_v24 = vmul.f32 0.03125, %v1761_v52  ;;  %p2528_p3 = por %p2527_p2, %p2526_p1 }
 0xad0   :  { %2516 = vrsqrt.f32 %v1768_v58 }
 0xad1   :  { %v1769_v20 = vadd.f32 1e-05, %v1765_v24  ;;  %p2529_p4 = pnand %p2528_p3, %p2522_p0 }
 0xad3   :  { %2518 = vrsqrt.f32 %v1769_v20 }
 0xad8   :  { %v2513_v30 = vpop.eup %2512 }
 0xad9   :  { %v1774_v46 = vmul.f32 %v2513_v30, %v1742_v54 }
 0xadb   :  { %v1782_v31 = vmul.f32 %v1781_v50, %v1774_v46 }
 0xadc   :  { %v2515_v33 = vpop.eup %2514 }
 0xadd   :  { %v2517_v34 = vpop.eup %2516  ;;  %v1775_v41 = vmul.f32 %v2515_v33, %v1743_v3  ;;  %v1790_v19 = vadd.f32 %v1789_v49, %v1782_v31 }
 0xade   :  { %v1776_v36 = vmul.f32 %v2517_v34, %v1744_v18 }
 0xadf   :  { %v1783_v10 = vmul.f32 %v1781_v50, %v1775_v41  ;;  %v1794_v40 = vsel %vm203_vm2, %v1790_v19, 0.0 }
 0xae0   :  { %v2519_v38 = vpop.eup %2518  ;;  %v1784_v39 = vmul.f32 %v1781_v50, %v1776_v36 }
 0xae1   :  { %v1791_v44 = vadd.f32 %v1789_v49, %v1783_v10  ;;  %v1777_v9 = vmul.f32 %v2519_v38, %v1745_v61 }
 0xae2   :  { %v1792_v45 = vadd.f32 %v1789_v49, %v1784_v39 }
 0xae3   :  { %v1795_v42 = vsel %vm203_vm2, %v1791_v44, 0.0  ;;  %v1785_v2 = vmul.f32 %v1781_v50, %v1777_v9  ;;  %v1900_v50 = vrot.slane %v44_v47, %v1405_v17 }
 0xae4   :  { %v1796_v63 = vadd.f32 %v1795_v42, %v1794_v40  ;;  %v1803_v48 = vsel %vm203_vm2, %v1792_v45, 0.0 }
 0xae5   :  { %v1793_v15 = vadd.f32 %v1789_v49, %v1785_v2 }
 0xae6   :  { %v1797_v25 = vrot.slane %v1796_v63, 4 }
 0xae7   :  { %v1804_v26 = vsel %vm203_vm2, %v1793_v15, 0.0 }
 0xae8   :  { %v1805_v8 = vadd.f32 %v1804_v26, %v1803_v48  ;;  %v1798_v54 = vadd.f32 %v1797_v25, %v1796_v63 }
 0xaea   :  { %v1806_v21 = vrot.slane %v1805_v8, 4  ;;  %v1799_v13 = vrot.slane %v1798_v54, 2 }
 0xaec   :  { %v1800_v32 = vadd.f32 %v1799_v13, %v1798_v54  ;;  %v1807_v55 = vadd.f32 %v1806_v21, %v1805_v8 }
 0xaee   :  { %v1801_v14 = vrot.slane %v1800_v32, 1  ;;  %v1808_v3 = vrot.slane %v1807_v55, 2 }
 0xaf0   :  { %v1802_v18 = vadd.f32 %v1801_v14, %v1800_v32  ;;  %v1809_v5 = vadd.f32 %v1808_v3, %v1807_v55 }
 0xaf2   :  { %v1810_v56 = vrot.slane %v1809_v5, 1  ;;  %v1813_v35 = vmul.f32 0.0625, %v1802_v18 }
 0xaf4   :  { %v1811_v60 = vadd.f32 %v1810_v56, %v1809_v5  ;;  %v1815_v61 = vpack.c.bf16 %v1813_v35, %v1813_v35 }
 0xaf6   :  { %v1814_v16 = vmul.f32 0.0625, %v1811_v60  ;;  %v1827_v43 = vunpack.c.l.b16 %v1815_v61 }
 0xaf8   :  { %v1816_v62 = vpack.c.bf16 %v1814_v16, %v1814_v16 }
 0xafa   :  { %v1828_v0 = vunpack.c.l.b16 %v1816_v62 }
 0xafc   :  { %v1830_v29 = vsel %vm1829_vm8, %v1828_v0, %v1827_v43 }
 0xafd   :  { %v1831_v27 = vpack.c.b16 %v1830_v29, %v1830_v29 }
 0xaff   :  { %2313 = vmatmul.mubr.msk.bf16.vlgmr.msra.gmra.mxu0 %vm203_vm2, %v1831_v27 }
 0xb00   :  { %2317 = vmatpush3.bf16.msra.mxu0 %v2426_v1  ;;  %2324 = vmatprep.mubr.msk.bf16.mxu0 %vm2546_vm3, %v2545_v6 }
 0xb01   :  { %2318 = vmatprep.subr.bf16.mxu0 %v2545_v6 }
 0xb04   :  { %2319 = vmatpush3.bf16.msra.mxu0 %v2427_v51 }
 0xb05   :  { %2320 = vmatprep.subr.bf16.mxu0 %v2545_v6 }
 0xb08   :  { %2321 = vmatpush3.bf16.msra.mxu0 %v2428_v4 }
 0xb09   :  { %2322 = vmatprep.subr.bf16.mxu0 %v2545_v6  ;;  %v1977_v6 = vrot.slane %v44_v47, %v1533_v37 }
 0xb0c   :  { %2323 = vmatpush3.bf16.msra.mxu0 %v2429_v7 }
 0xbbf   :  { %v1881_v11 = vpop.f32.mrf.mxu0 }
 0xbc0   :  { %v1882_v53 = vadd.f32 %v1881_v11, %v1824_v23 }
 0xbc1   :  { %v2314_v12 = vpop.f32.mrf.mxu0 }
 0xbc2   :  { %v1887_v58 = vmax.f32 %v1882_v53, 0.0 }
 0xbc3   :  { %v1884_v52 = vpop.f32.mrf.mxu0 }
 0xbc4   :  { %v1888_v24 = vpack.c.bf16 %v1887_v58, %v1887_v58 }
 0xbc5   :  { %v2315_v20 = vpop.f32.mrf.mxu0 }
 0xbc6   :  { %2325 = vmatmul.mubr.msk.bf16.vlgmr.msra.gmra.mxu0 %vm1666_vm7, %v1888_v24 }
 0xc86   :  { %v1962_v28 = vpop.f32.mrf.mxu0 }
 0xc87   :  { %v1963_v30 = vadd.f32 %v1962_v28, %v1900_v50 }
 0xc88   :  { %v2326_v46 = vpop.f32.mrf.mxu0 }
 0xc89   :  { %v1968_v49 = vmax.f32 %v1963_v30, 0.0 }
 0xc8a   :  { %v1965_v31 = vpop.f32.mrf.mxu0 }
 0xc8b   :  { %v1969_v33 = vpack.c.bf16 %v1968_v49, %v1968_v49 }
 0xc8c   :  { %v2327_v34 = vpop.f32.mrf.mxu0 }
 0xc8d   :  { %2333 = vmatmul.mubr.msk.bf16.vlgmr.msra.gmra.mxu1 %vm203_vm2, %v1969_v33 }
 0xd4d   :  { %v2027_v41 = vpop.f32.mrf.mxu1 }
 0xd4e   :  { %v2028_v36 = vadd.f32 %v2027_v41, %v1977_v6 }
 0xd4f   :  { %v2334_v19 = vpop.f32.mrf.mxu1 }
 0xd50   :  { %2033 = vst [vmem:[#allocation2] sm:$0x3] %v2028_v36 }
 0xd51   :  { %v2030_v17 = vpop.f32.mrf.mxu1 }
 0xd52   :  { %2532 = shalt.err (!%p2529_p4)
}
 0xd53   :  { %2043 = dma.vmem_to_hbm [thread:$0]  %s2041_s2, 32, %s3143_s12, [#allocation3]   ;;  %v2335_v57 = vpop.f32.mrf.mxu1 }
 0xd54   :  { %2541 = dma.done.wait [#allocation3], 32  }
 0xd55   :  { %2542 = vsyncadd [#allocation3], 4294967264 }
 0xd56   :  { %2047 = vsyncpa [#allocation3], 1 }

</bundles_post_ra>
